<compile_context>
chip_gen: v5e
topology: v5e:2x2
jax: 0.10.0
libtpu: 0.0.40
codegen_flags: <defaults>
</compile_context>

<pallas_src>
import functools

import jax
import jax.numpy as jnp
from jax import lax
from jax.experimental import pallas as pl
from jax.experimental.pallas import tpu as pltpu

NEG_SLOPE = 0.2   # LeakyReLU slope chosen for get_activ_layer
EPS = 1e-6


# ----------------------------------------------------------------------------
# Fused kernel: one row tile of (modconv1 + LeakyReLU + modconv2 + LeakyReLU),
# with modulation/demodulation pre-folded into per-sample weights.
# ----------------------------------------------------------------------------
def _fused_modconv_kernel(x_main_ref, x_top0_ref, x_top1_ref, x_bot0_ref,
                          x_bot1_ref, w1_ref, b1_ref, w2_ref, b2_ref,
                          o_ref, xwin_ref, y1_ref, *, neg_slope, target_m):
    # x_main_ref: (1, TH, W, Cin)   image rows [r*TH, r*TH+TH)
    # x_top*_ref: (1, 1,  W, Cin)   image rows r*TH-2, r*TH-1   (clamped; zeroed at r==0)
    # x_bot*_ref: (1, 1,  W, Cin)   image rows r*TH+TH, +TH+1   (clamped; zeroed at last r)
    # w1_ref: (1, 9*Cin,  Cmid)  per-sample folded weights;  b1_ref: (1, 1, Cmid)
    # w2_ref: (1, 9*Cmid, Cout)                              b2_ref: (1, 1, Cout)
    # o_ref:  (1, TH, W, Cout)
    # xwin_ref: (TH+4, W+2, Cin)   scratch, row i <-> image row r*TH-2+i, col j <-> image col j-1
    # y1_ref:   (TH+2, W+2, Cmid)  scratch, row j <-> image row r*TH-1+j, col j <-> image col j-1
    TH = x_main_ref.shape[1]
    W = x_main_ref.shape[2]
    Cin = x_main_ref.shape[3]
    Cmid = w1_ref.shape[2]
    Cout = w2_ref.shape[2]
    r = pl.program_id(1)
    num_r = pl.num_programs(1)
    cdt = xwin_ref.dtype

    # ---- assemble the halo'd x window with in-kernel SAME zero padding ------
    xwin_ref[:, 0:1, :] = jnp.zeros((TH + 4, 1, Cin), cdt)          # image col -1
    xwin_ref[:, W + 1:W + 2, :] = jnp.zeros((TH + 4, 1, Cin), cdt)  # image col W
    xwin_ref[2:TH + 2, 1:W + 1, :] = x_main_ref[0].astype(cdt)

    @pl.when(r > 0)
    def _():
        xwin_ref[0:1, 1:W + 1, :] = x_top0_ref[0].astype(cdt)
        xwin_ref[1:2, 1:W + 1, :] = x_top1_ref[0].astype(cdt)

    @pl.when(r == 0)
    def _():
        xwin_ref[0:2, 1:W + 1, :] = jnp.zeros((2, W, Cin), cdt)

    @pl.when(r < num_r - 1)
    def _():
        xwin_ref[TH + 2:TH + 3, 1:W + 1, :] = x_bot0_ref[0].astype(cdt)
        xwin_ref[TH + 3:TH + 4, 1:W + 1, :] = x_bot1_ref[0].astype(cdt)

    @pl.when(r == num_r - 1)
    def _():
        xwin_ref[TH + 2:TH + 4, 1:W + 1, :] = jnp.zeros((2, W, Cin), cdt)

    # ---- direct 3x3 conv: 9 accumulating MXU matmuls, chunked epilogue ------
    def conv3x3(src_ref, wf_ref, bf_ref, n_rows, c_src, c_dst, store):
        bias = bf_ref[0].astype(jnp.float32)                     # (1, c_dst)
        rows_per_chunk = max(1, min(n_rows, target_m // W))
        for c0 in range(0, n_rows, rows_per_chunk):
            c1 = min(c0 + rows_per_chunk, n_rows)
            m = (c1 - c0) * W
            acc = jnp.zeros((m, c_dst), jnp.float32)
            for kh in range(3):
                for kw in range(3):
                    t = kh * 3 + kw
                    # output row j uses src rows j..j+2, cols kw..kw+W-1
                    tap = src_ref[c0 + kh:c1 + kh, kw:kw + W, :].reshape(m, c_src)
                    w_tap = wf_ref[0, t * c_src:(t + 1) * c_src, :]
                    acc = acc + jnp.dot(tap, w_tap,
                                        preferred_element_type=jnp.float32)
            acc = acc + bias
            acc = jnp.where(acc >= 0, acc, neg_slope * acc)       # LeakyReLU(0.2)
            store(c0, c1, acc.reshape(c1 - c0, W, c_dst))

    def store_y1(c0, c1, v):
        y1_ref[c0:c1, 1:W + 1, :] = v.astype(cdt)

    def store_out(c0, c1, v):
        o_ref[0:1, c0:c1, :, :] = v[None].astype(o_ref.dtype)

    # conv1 + LeakyReLU -> y1 tile (incl. 1-row halo) kept in VMEM
    conv3x3(xwin_ref, w1_ref, b1_ref, TH + 2, Cin, Cmid, store_y1)

    # conv2's SAME padding: y1 positions outside the image are exactly zero
    y1_ref[:, 0:1, :] = jnp.zeros((TH + 2, 1, Cmid), cdt)
    y1_ref[:, W + 1:W + 2, :] = jnp.zeros((TH + 2, 1, Cmid), cdt)

    @pl.when(r == 0)
    def _():
        y1_ref[0:1, :, :] = jnp.zeros((1, W + 2, Cmid), cdt)

    @pl.when(r == num_r - 1)
    def _():
        y1_ref[TH + 1:TH + 2, :, :] = jnp.zeros((1, W + 2, Cmid), cdt)

    # conv2 + LeakyReLU straight into the output tile (y1 never touches HBM)
    conv3x3(y1_ref, w2_ref, b2_ref, TH, Cmid, Cout, store_out)


# ----------------------------------------------------------------------------
# Tiling / VMEM budgeting
# ----------------------------------------------------------------------------
def _vmem_capacity_bytes():
    try:
        return int(pltpu.get_tpu_info().vmem_capacity_bytes)
    except Exception:
        return 64 << 20          # conservative fallback (v7x per-TC VMEM)


def _pick_tile_rows(H, W, Cin, Cmid, Cout, in_bytes, cbytes, budget_bytes):
    """Largest divisor of H whose full per-step VMEM bill fits the budget."""
    fixed = (2 * 9 * (Cin * Cmid + Cmid * Cout) * cbytes   # folded weights, x2 buffers
             + 8 * 2 * W * Cin * in_bytes                  # 4 halo-row specs, x2 buffers
             + 6 * (W + 2) * max(Cin, Cmid) * cbytes       # window / y1 halo rows
             + (1 << 20))                                  # slack (acc, biases, ...)
    per_row = (2 * W * Cin * in_bytes        # input slab (double buffered)
               + 2 * W * Cout * in_bytes     # output tile (double buffered)
               + (W + 2) * Cin * cbytes      # x window scratch
               + (W + 2) * Cmid * cbytes)    # y1 scratch
    max_rows = max(1, (budget_bytes - fixed) // per_row)
    # TODO(synk): masked short last tile so prime H does not fall to tile_rows=1.
    th = 1
    for d in range(1, min(H, max_rows) + 1):
        if H % d == 0:
            th = d
    return th


def fused_modnet_block(x, w1f, b1f, w2f, b2f, *, tile_rows=None,
                       compute_dtype=jnp.float32, target_m=2048):
    """Fused (modconv1 + activ + modconv2 + activ) on NHWC input.

    x: (N,H,W,Cin); w1f: (N,9*Cin,Cmid); b1f: (N,1,Cmid);
    w2f: (N,9*Cmid,Cout); b2f: (N,1,Cout).
    """
    N, H, W, Cin = x.shape
    Cmid = w1f.shape[-1]
    Cout = w2f.shape[-1]
    in_bytes = x.dtype.itemsize
    cbytes = jnp.dtype(compute_dtype).itemsize

    cap = _vmem_capacity_bytes()
    budget = min(24 << 20, cap // 3)                    # generation-aware budget
    TH = tile_rows if tile_rows is not None else _pick_tile_rows(
        H, W, Cin, Cmid, Cout, in_bytes, cbytes, budget)
    assert H % TH == 0, "tile_rows must divide H (TODO(synk): masked last tile)"
    num_r = H // TH

    kernel = functools.partial(_fused_modconv_kernel,
                               neg_slope=NEG_SLOPE, target_m=target_m)

    return pl.pallas_call(
        kernel,
        out_shape=jax.ShapeDtypeStruct((N, H, W, Cout), x.dtype),
        grid_spec=pltpu.PrefetchScalarGridSpec(
            num_scalar_prefetch=0,
            grid=(N, num_r),
            in_specs=[
                # TH-row slab of the (un-padded) input.
                pl.BlockSpec((1, TH, W, Cin), lambda n, r: (n, r, 0, 0)),
                # 2 top / 2 bottom single-row halo fetches, clamped at the image
                # edges (the clamped rows are overwritten with zeros in-kernel).
                pl.BlockSpec((1, 1, W, Cin),
                             lambda n, r: (n, jnp.maximum(r * TH - 2, 0), 0, 0)),
                pl.BlockSpec((1, 1, W, Cin),
                             lambda n, r: (n, jnp.maximum(r * TH - 1, 0), 0, 0)),
                pl.BlockSpec((1, 1, W, Cin),
                             lambda n, r: (n, jnp.minimum(r * TH + TH, H - 1), 0, 0)),
                pl.BlockSpec((1, 1, W, Cin),
                             lambda n, r: (n, jnp.minimum(r * TH + TH + 1, H - 1), 0, 0)),
                # Per-sample folded weights/biases (DMA skipped while n fixed).
                pl.BlockSpec((1, 9 * Cin, Cmid), lambda n, r: (n, 0, 0)),
                pl.BlockSpec((1, 1, Cmid), lambda n, r: (n, 0, 0)),
                pl.BlockSpec((1, 9 * Cmid, Cout), lambda n, r: (n, 0, 0)),
                pl.BlockSpec((1, 1, Cout), lambda n, r: (n, 0, 0)),
            ],
            out_specs=pl.BlockSpec((1, TH, W, Cout), lambda n, r: (n, r, 0, 0)),
            scratch_shapes=[
                pltpu.VMEM((TH + 4, W + 2, Cin), compute_dtype),   # halo'd x window
                pltpu.VMEM((TH + 2, W + 2, Cmid), compute_dtype),  # y1 tile (+halo)
            ],
        ),
        compiler_params=pltpu.CompilerParams(
            dimension_semantics=("parallel", "parallel"),
            vmem_limit_bytes=int(min(cap, 128 << 20) * 3 // 4),
        ),
    )(x, x, x, x, x, w1f, b1f, w2f, b2f)


# ----------------------------------------------------------------------------
# Plain-JAX glue: StyleBlock affine, demodulation scale, weight folding
# ----------------------------------------------------------------------------
def style_scale(mod, aff_w, aff_b, re_alpha):
    # StyleBlock.forward: s = 1 + re_alpha * Linear(mod)
    return 1.0 + re_alpha * (mod @ aff_w.T + aff_b)


def demod_scale(s, w, eps=EPS):
    # get_demod_scale with HWIO weights: sum the 3x3 taps, contract Cin.
    w_sq = jnp.sum(w * w, axis=(0, 1))                 # (Cin, Cout)
    sigma_sq = jnp.einsum('ni,io->no', s * s, w_sq)    # (N, Cout)
    return 1.0 / jnp.sqrt(sigma_sq + eps)


def _fold(w, b, s, sd, compute_dtype):
    # (conv(x*s) + b) * sd  ==  conv_{w*s*sd}(x) + b*sd
    n = s.shape[0]
    kh, kw, cin, cout = w.shape
    wf = w[None] * s[:, None, None, :, None] * sd[:, None, None, None, :]
    wf = wf.reshape(n, kh * kw * cin, cout).astype(compute_dtype)
    bf = (b[None, :] * sd)[:, None, :]                 # (N, 1, Cout), f32
    return wf, bf


def modnet_basic_block(x_nchw, mod, params, *, tile_rows=None,
                       compute_dtype=jnp.float32):
    """ModNetBasicBlock.forward.  x_nchw: (N, Cin, H, W), mod: (N, mod_features)."""
    x = jnp.transpose(x_nchw, (0, 2, 3, 1))            # NCHW -> NHWC

    s1 = style_scale(mod, params['aff1_w'], params['aff1_b'], params['re_alpha1'])
    sd1 = demod_scale(s1, params['w1'])
    w1f, b1f = _fold(params['w1'], params['b1'], s1, sd1, compute_dtype)

    s2 = style_scale(mod, params['aff2_w'], params['aff2_b'], params['re_alpha2'])
    sd2 = demod_scale(s2, params['w2'])
    w2f, b2f = _fold(params['w2'], params['b2'], s2, sd2, compute_dtype)

    y2 = fused_modnet_block(x, w1f, b1f, w2f, b2f,
                            tile_rows=tile_rows, compute_dtype=compute_dtype)
    return jnp.transpose(y2, (0, 3, 1, 2))             # NHWC -> NCHW


# ----------------------------------------------------------------------------
# Pure-JAX reference (faithful torch ordering)
# ----------------------------------------------------------------------------
def reference_forward(x_nchw, mod, params, precision=lax.Precision.HIGHEST):
    """(conv(x*s) + b) * sd -> LeakyReLU, twice."""
    x = jnp.transpose(x_nchw, (0, 2, 3, 1))

    def block(xin, aff_w, aff_b, ra, w, b):
        s = style_scale(mod, aff_w, aff_b, ra)
        y = lax.conv_general_dilated(
            xin * s[:, None, None, :], w, (1, 1), 'SAME',
            dimension_numbers=('NHWC', 'HWIO', 'NHWC'), precision=precision)
        y = y + b[None, None, None, :]
        y = y * demod_scale(s, w)[:, None, None, :]
        return jnp.where(y >= 0, y, NEG_SLOPE * y)

    y1 = block(x, params['aff1_w'], params['aff1_b'], params['re_alpha1'],
               params['w1'], params['b1'])
    y2 = block(y1, params['aff2_w'], params['aff2_b'], params['re_alpha2'],
               params['w2'], params['b2'])
    return jnp.transpose(y2, (0, 3, 1, 2))


# ----------------------------------------------------------------------------
def _make_params(key, Cin, Cmid, Cout, MODF):
    ks = jax.random.split(key, 8)
    return {
        'aff1_w': 0.1 * jax.random.normal(ks[0], (Cin, MODF), jnp.float32),
        'aff1_b': 0.1 * jax.random.normal(ks[1], (Cin,), jnp.float32),
        're_alpha1': jnp.float32(0.1),   # nonzero so the modulation path is exercised
        'w1': 0.2 * jax.random.normal(ks[2], (3, 3, Cin, Cmid), jnp.float32),
        'b1': 0.1 * jax.random.normal(ks[3], (Cmid,), jnp.float32),
        'aff2_w': 0.1 * jax.random.normal(ks[4], (Cmid, MODF), jnp.float32),
        'aff2_b': 0.1 * jax.random.normal(ks[5], (Cmid,), jnp.float32),
        're_alpha2': jnp.float32(0.2),
        'w2': 0.2 * jax.random.normal(ks[6], (3, 3, Cmid, Cout), jnp.float32),
        'b2': 0.1 * jax.random.normal(ks[7], (Cout,), jnp.float32),
    }


def _run_case(key, *, N, Cin, Cmid, Cout, H, W, MODF, tile_rows=None,
              compute_dtype=jnp.float32, atol=5e-3, rtol=5e-3):
    kp, kx, km = jax.random.split(key, 3)
    params = _make_params(kp, Cin, Cmid, Cout, MODF)
    x = jax.random.normal(kx, (N, Cin, H, W), jnp.float32)    # NCHW, as in torch
    mod = jax.random.normal(km, (N, MODF), jnp.float32)

    fwd = jax.jit(functools.partial(modnet_basic_block, tile_rows=tile_rows,
                                    compute_dtype=compute_dtype))
    out = jax.block_until_ready(fwd(x, mod, params))
    assert out.shape == (N, Cout, H, W)

    ref = reference_forward(x, mod, params)
    err = float(jnp.max(jnp.abs(out - ref)))
    assert jnp.allclose(out, ref, atol=atol, rtol=rtol), \
        f"kernel vs reference: max abs diff {err}"


if __name__ == "__main__":
    key = jax.random.PRNGKey(0)
    k1, k2, k3 = jax.random.split(key, 3)

    # (1) small mixed-channel case, forced 4-row tiles: exercises the top-edge,
    #     interior-halo and bottom-edge paths of the in-kernel SAME padding.
    _run_case(k1, N=2, Cin=4, Cmid=6, Cout=8, H=16, W=16, MODF=8, tile_rows=4)

    # (2) lane-dense 128-channel case with automatic (VMEM-budget) tiling,
    #     exercising the MXU / 128-lane store path.
    _run_case(k2, N=2, Cin=128, Cmid=128, Cout=128, H=32, W=32, MODF=16)

    # (3) bf16 MXU operands (f32 accumulation/epilogue), multi-tile (opt-in path).
    _run_case(k3, N=1, Cin=128, Cmid=128, Cout=128, H=16, W=16, MODF=16,
              tile_rows=8, compute_dtype=jnp.bfloat16, atol=0.15, rtol=0.05)

    print("KERNEL_OK")
</pallas_src>

<mosaic_0001>
module attributes {stable_mosaic.version = 11 : i64} {
  func.func @_fused_modconv_kernel(%arg0: i32, %arg1: i32, %arg2: memref<1x4x16x4xf32, #tpu.memory_space<vmem>>, %arg3: memref<1x1x16x4xf32, #tpu.memory_space<vmem>>, %arg4: memref<1x1x16x4xf32, #tpu.memory_space<vmem>>, %arg5: memref<1x1x16x4xf32, #tpu.memory_space<vmem>>, %arg6: memref<1x1x16x4xf32, #tpu.memory_space<vmem>>, %arg7: memref<1x36x6xf32, #tpu.memory_space<vmem>>, %arg8: memref<1x1x6xf32, #tpu.memory_space<vmem>>, %arg9: memref<1x54x8xf32, #tpu.memory_space<vmem>>, %arg10: memref<1x1x8xf32, #tpu.memory_space<vmem>>, %arg11: memref<1x4x16x8xf32, #tpu.memory_space<vmem>>, %arg12: memref<8x18x4xf32, #tpu.memory_space<vmem>>, %arg13: memref<6x18x6xf32, #tpu.memory_space<vmem>>) attributes {dimension_semantics = [#tpu.dimension_semantics<parallel>, #tpu.dimension_semantics<parallel>], iteration_bounds = array<i64: 2, 4>, scalar_prefetch = 0 : i64, scratch_operands = 2 : i64, tpu.core_type = #tpu.core_type<tc>, window_params = [{transform_indices = @transform_0, window_bounds = array<i64: 1, 4, 16, 4>}, {transform_indices = @transform_1, window_bounds = array<i64: 1, 1, 16, 4>}, {transform_indices = @transform_2, window_bounds = array<i64: 1, 1, 16, 4>}, {transform_indices = @transform_3, window_bounds = array<i64: 1, 1, 16, 4>}, {transform_indices = @transform_4, window_bounds = array<i64: 1, 1, 16, 4>}, {transform_indices = @transform_5, window_bounds = array<i64: 1, 36, 6>}, {transform_indices = @transform_6, window_bounds = array<i64: 1, 1, 6>}, {transform_indices = @transform_7, window_bounds = array<i64: 1, 54, 8>}, {transform_indices = @transform_8, window_bounds = array<i64: 1, 1, 8>}, {transform_indices = @transform_9, window_bounds = array<i64: 1, 4, 16, 8>}]} {
    %cst = arith.constant 0.000000e+00 : f32
    %0 = vector.broadcast %cst : f32 to vector<8x1x4xf32>
    %c0 = arith.constant 0 : index
    %c0_0 = arith.constant 0 : index
    %c0_1 = arith.constant 0 : index
    %1 = vector.load %arg12[%c0, %c0_0, %c0_1] : memref<8x18x4xf32, #tpu.memory_space<vmem>>, vector<8x1x4xf32>
    tpu.vector_store %arg12[%c0, %c0_0, %c0_1], %0 {strides = array<i32>} : memref<8x18x4xf32, #tpu.memory_space<vmem>>, vector<8x1x4xf32>,
    %cst_2 = arith.constant 0.000000e+00 : f32
    %2 = vector.broadcast %cst_2 : f32 to vector<8x1x4xf32>
    %c0_3 = arith.constant 0 : index
    %c17 = arith.constant 17 : index
    %c0_4 = arith.constant 0 : index
    %3 = vector.load %arg12[%c0_3, %c17, %c0_4] : memref<8x18x4xf32, #tpu.memory_space<vmem>>, vector<8x1x4xf32>
    tpu.vector_store %arg12[%c0_3, %c17, %c0_4], %2 {strides = array<i32>} : memref<8x18x4xf32, #tpu.memory_space<vmem>>, vector<8x1x4xf32>,
    %c0_5 = arith.constant 0 : index
    %c0_6 = arith.constant 0 : index
    %c0_7 = arith.constant 0 : index
    %c0_8 = arith.constant 0 : index
    %4 = vector.load %arg2[%c0_5, %c0_6, %c0_7, %c0_8] : memref<1x4x16x4xf32, #tpu.memory_space<vmem>>, vector<1x4x16x4xf32>
    %5 = vector.shape_cast %4 : vector<1x4x16x4xf32> to vector<4x16x4xf32>
    %c2 = arith.constant 2 : index
    %c1 = arith.constant 1 : index
    %c0_9 = arith.constant 0 : index
    %6 = vector.load %arg12[%c2, %c1, %c0_9] : memref<8x18x4xf32, #tpu.memory_space<vmem>>, vector<4x16x4xf32>
    tpu.vector_store %arg12[%c2, %c1, %c0_9], %5 {strides = array<i32>} : memref<8x18x4xf32, #tpu.memory_space<vmem>>, vector<4x16x4xf32>,
    %c0_i32 = arith.constant 0 : i32
    %7 = arith.cmpi sgt, %arg1, %c0_i32 : i32
    %8 = arith.extui %7 : i1 to i32
    %c0_i32_10 = arith.constant 0 : i32
    %9 = arith.cmpi ne, %8, %c0_i32_10 : i32
    scf.if %9 {
      %c0_159 = arith.constant 0 : index
      %c0_160 = arith.constant 0 : index
      %c0_161 = arith.constant 0 : index
      %c0_162 = arith.constant 0 : index
      %162 = vector.load %arg3[%c0_159, %c0_160, %c0_161, %c0_162] : memref<1x1x16x4xf32, #tpu.memory_space<vmem>>, vector<1x1x16x4xf32>
      %163 = vector.shape_cast %162 : vector<1x1x16x4xf32> to vector<1x16x4xf32>
      %c0_163 = arith.constant 0 : index
      %c1_164 = arith.constant 1 : index
      %c0_165 = arith.constant 0 : index
      %164 = vector.load %arg12[%c0_163, %c1_164, %c0_165] : memref<8x18x4xf32, #tpu.memory_space<vmem>>, vector<1x16x4xf32>
      tpu.vector_store %arg12[%c0_163, %c1_164, %c0_165], %163 {strides = array<i32>} : memref<8x18x4xf32, #tpu.memory_space<vmem>>, vector<1x16x4xf32>,
      %c0_166 = arith.constant 0 : index
      %c0_167 = arith.constant 0 : index
      %c0_168 = arith.constant 0 : index
      %c0_169 = arith.constant 0 : index
      %165 = vector.load %arg4[%c0_166, %c0_167, %c0_168, %c0_169] : memref<1x1x16x4xf32, #tpu.memory_space<vmem>>, vector<1x1x16x4xf32>
      %166 = vector.shape_cast %165 : vector<1x1x16x4xf32> to vector<1x16x4xf32>
      %c1_170 = arith.constant 1 : index
      %c1_171 = arith.constant 1 : index
      %c0_172 = arith.constant 0 : index
      %167 = vector.load %arg12[%c1_170, %c1_171, %c0_172] : memref<8x18x4xf32, #tpu.memory_space<vmem>>, vector<1x16x4xf32>
      tpu.vector_store %arg12[%c1_170, %c1_171, %c0_172], %166 {strides = array<i32>} : memref<8x18x4xf32, #tpu.memory_space<vmem>>, vector<1x16x4xf32>,
    } else {
    }
    %c0_i32_11 = arith.constant 0 : i32
    %10 = arith.cmpi eq, %arg1, %c0_i32_11 : i32
    %11 = arith.extui %10 : i1 to i32
    %c0_i32_12 = arith.constant 0 : i32
    %12 = arith.cmpi ne, %11, %c0_i32_12 : i32
    scf.if %12 {
      %cst_159 = arith.constant 0.000000e+00 : f32
      %162 = vector.broadcast %cst_159 : f32 to vector<2x16x4xf32>
      %c0_160 = arith.constant 0 : index
      %c1_161 = arith.constant 1 : index
      %c0_162 = arith.constant 0 : index
      %163 = vector.load %arg12[%c0_160, %c1_161, %c0_162] : memref<8x18x4xf32, #tpu.memory_space<vmem>>, vector<2x16x4xf32>
      tpu.vector_store %arg12[%c0_160, %c1_161, %c0_162], %162 {strides = array<i32>} : memref<8x18x4xf32, #tpu.memory_space<vmem>>, vector<2x16x4xf32>,
    } else {
    }
    %c3_i32 = arith.constant 3 : i32
    %13 = arith.cmpi slt, %arg1, %c3_i32 : i32
    %14 = arith.extui %13 : i1 to i32
    %c0_i32_13 = arith.constant 0 : i32
    %15 = arith.cmpi ne, %14, %c0_i32_13 : i32
    scf.if %15 {
      %c0_159 = arith.constant 0 : index
      %c0_160 = arith.constant 0 : index
      %c0_161 = arith.constant 0 : index
      %c0_162 = arith.constant 0 : index
      %162 = vector.load %arg5[%c0_159, %c0_160, %c0_161, %c0_162] : memref<1x1x16x4xf32, #tpu.memory_space<vmem>>, vector<1x1x16x4xf32>
      %163 = vector.shape_cast %162 : vector<1x1x16x4xf32> to vector<1x16x4xf32>
      %c6_163 = arith.constant 6 : index
      %c1_164 = arith.constant 1 : index
      %c0_165 = arith.constant 0 : index
      %164 = vector.load %arg12[%c6_163, %c1_164, %c0_165] : memref<8x18x4xf32, #tpu.memory_space<vmem>>, vector<1x16x4xf32>
      tpu.vector_store %arg12[%c6_163, %c1_164, %c0_165], %163 {strides = array<i32>} : memref<8x18x4xf32, #tpu.memory_space<vmem>>, vector<1x16x4xf32>,
      %c0_166 = arith.constant 0 : index
      %c0_167 = arith.constant 0 : index
      %c0_168 = arith.constant 0 : index
      %c0_169 = arith.constant 0 : index
      %165 = vector.load %arg6[%c0_166, %c0_167, %c0_168, %c0_169] : memref<1x1x16x4xf32, #tpu.memory_space<vmem>>, vector<1x1x16x4xf32>
      %166 = vector.shape_cast %165 : vector<1x1x16x4xf32> to vector<1x16x4xf32>
      %c7 = arith.constant 7 : index
      %c1_170 = arith.constant 1 : index
      %c0_171 = arith.constant 0 : index
      %167 = vector.load %arg12[%c7, %c1_170, %c0_171] : memref<8x18x4xf32, #tpu.memory_space<vmem>>, vector<1x16x4xf32>
      tpu.vector_store %arg12[%c7, %c1_170, %c0_171], %166 {strides = array<i32>} : memref<8x18x4xf32, #tpu.memory_space<vmem>>, vector<1x16x4xf32>,
    } else {
    }
    %c3_i32_14 = arith.constant 3 : i32
    %16 = arith.cmpi eq, %arg1, %c3_i32_14 : i32
    %17 = arith.extui %16 : i1 to i32
    %c0_i32_15 = arith.constant 0 : i32
    %18 = arith.cmpi ne, %17, %c0_i32_15 : i32
    scf.if %18 {
      %cst_159 = arith.constant 0.000000e+00 : f32
      %162 = vector.broadcast %cst_159 : f32 to vector<2x16x4xf32>
      %c6_160 = arith.constant 6 : index
      %c1_161 = arith.constant 1 : index
      %c0_162 = arith.constant 0 : index
      %163 = vector.load %arg12[%c6_160, %c1_161, %c0_162] : memref<8x18x4xf32, #tpu.memory_space<vmem>>, vector<2x16x4xf32>
      tpu.vector_store %arg12[%c6_160, %c1_161, %c0_162], %162 {strides = array<i32>} : memref<8x18x4xf32, #tpu.memory_space<vmem>>, vector<2x16x4xf32>,
    } else {
    }
    %c0_16 = arith.constant 0 : index
    %c0_17 = arith.constant 0 : index
    %c0_18 = arith.constant 0 : index
    %19 = vector.load %arg8[%c0_16, %c0_17, %c0_18] : memref<1x1x6xf32, #tpu.memory_space<vmem>>, vector<1x1x6xf32>
    %20 = vector.shape_cast %19 : vector<1x1x6xf32> to vector<1x6xf32>
    %cst_19 = arith.constant 0.000000e+00 : f32
    %21 = vector.broadcast %cst_19 : f32 to vector<96x6xf32>
    %c0_20 = arith.constant 0 : index
    %c0_21 = arith.constant 0 : index
    %c0_22 = arith.constant 0 : index
    %22 = vector.load %arg12[%c0_20, %c0_21, %c0_22] : memref<8x18x4xf32, #tpu.memory_space<vmem>>, vector<6x16x4xf32>
    %23 = vector.shape_cast %22 : vector<6x16x4xf32> to vector<96x4xf32>
    %c0_23 = arith.constant 0 : index
    %c0_24 = arith.constant 0 : index
    %c0_25 = arith.constant 0 : index
    %24 = vector.load %arg7[%c0_23, %c0_24, %c0_25] : memref<1x36x6xf32, #tpu.memory_space<vmem>>, vector<1x4x6xf32>
    %25 = vector.shape_cast %24 : vector<1x4x6xf32> to vector<4x6xf32>
    %cst_26 = arith.constant dense<0.000000e+00> : vector<96x6xf32>
    %26 = tpu.matmul %23, %25, %cst_26 {dimension_numbers = #tpu.dot_dimension_numbers<[1], [0], [0], [1], [0, 0, 1, 1], [], []>} : vector<96x4xf32>, vector<4x6xf32>, vector<96x6xf32> -> vector<96x6xf32>
    %27 = arith.addf %21, %26 : vector<96x6xf32>
    %c0_27 = arith.constant 0 : index
    %c1_28 = arith.constant 1 : index
    %c0_29 = arith.constant 0 : index
    %28 = vector.load %arg12[%c0_27, %c1_28, %c0_29] : memref<8x18x4xf32, #tpu.memory_space<vmem>>, vector<6x16x4xf32>
    %29 = vector.shape_cast %28 : vector<6x16x4xf32> to vector<96x4xf32>
    %c0_30 = arith.constant 0 : index
    %c4 = arith.constant 4 : index
    %c0_31 = arith.constant 0 : index
    %30 = vector.load %arg7[%c0_30, %c4, %c0_31] : memref<1x36x6xf32, #tpu.memory_space<vmem>>, vector<1x4x6xf32>
    %31 = vector.shape_cast %30 : vector<1x4x6xf32> to vector<4x6xf32>
    %cst_32 = arith.constant dense<0.000000e+00> : vector<96x6xf32>
    %32 = tpu.matmul %29, %31, %cst_32 {dimension_numbers = #tpu.dot_dimension_numbers<[1], [0], [0], [1], [0, 0, 1, 1], [], []>} : vector<96x4xf32>, vector<4x6xf32>, vector<96x6xf32> -> vector<96x6xf32>
    %33 = arith.addf %27, %32 : vector<96x6xf32>
    %c0_33 = arith.constant 0 : index
    %c2_34 = arith.constant 2 : index
    %c0_35 = arith.constant 0 : index
    %34 = vector.load %arg12[%c0_33, %c2_34, %c0_35] : memref<8x18x4xf32, #tpu.memory_space<vmem>>, vector<6x16x4xf32>
    %35 = vector.shape_cast %34 : vector<6x16x4xf32> to vector<96x4xf32>
    %c0_36 = arith.constant 0 : index
    %c8 = arith.constant 8 : index
    %c0_37 = arith.constant 0 : index
    %36 = vector.load %arg7[%c0_36, %c8, %c0_37] : memref<1x36x6xf32, #tpu.memory_space<vmem>>, vector<1x4x6xf32>
    %37 = vector.shape_cast %36 : vector<1x4x6xf32> to vector<4x6xf32>
    %cst_38 = arith.constant dense<0.000000e+00> : vector<96x6xf32>
    %38 = tpu.matmul %35, %37, %cst_38 {dimension_numbers = #tpu.dot_dimension_numbers<[1], [0], [0], [1], [0, 0, 1, 1], [], []>} : vector<96x4xf32>, vector<4x6xf32>, vector<96x6xf32> -> vector<96x6xf32>
    %39 = arith.addf %33, %38 : vector<96x6xf32>
    %c1_39 = arith.constant 1 : index
    %c0_40 = arith.constant 0 : index
    %c0_41 = arith.constant 0 : index
    %40 = vector.load %arg12[%c1_39, %c0_40, %c0_41] : memref<8x18x4xf32, #tpu.memory_space<vmem>>, vector<6x16x4xf32>
    %41 = vector.shape_cast %40 : vector<6x16x4xf32> to vector<96x4xf32>
    %c0_42 = arith.constant 0 : index
    %c12 = arith.constant 12 : index
    %c0_43 = arith.constant 0 : index
    %42 = vector.load %arg7[%c0_42, %c12, %c0_43] : memref<1x36x6xf32, #tpu.memory_space<vmem>>, vector<1x4x6xf32>
    %43 = vector.shape_cast %42 : vector<1x4x6xf32> to vector<4x6xf32>
    %cst_44 = arith.constant dense<0.000000e+00> : vector<96x6xf32>
    %44 = tpu.matmul %41, %43, %cst_44 {dimension_numbers = #tpu.dot_dimension_numbers<[1], [0], [0], [1], [0, 0, 1, 1], [], []>} : vector<96x4xf32>, vector<4x6xf32>, vector<96x6xf32> -> vector<96x6xf32>
    %45 = arith.addf %39, %44 : vector<96x6xf32>
    %c1_45 = arith.constant 1 : index
    %c1_46 = arith.constant 1 : index
    %c0_47 = arith.constant 0 : index
    %46 = vector.load %arg12[%c1_45, %c1_46, %c0_47] : memref<8x18x4xf32, #tpu.memory_space<vmem>>, vector<6x16x4xf32>
    %47 = vector.shape_cast %46 : vector<6x16x4xf32> to vector<96x4xf32>
    %c0_48 = arith.constant 0 : index
    %c16 = arith.constant 16 : index
    %c0_49 = arith.constant 0 : index
    %48 = vector.load %arg7[%c0_48, %c16, %c0_49] : memref<1x36x6xf32, #tpu.memory_space<vmem>>, vector<1x4x6xf32>
    %49 = vector.shape_cast %48 : vector<1x4x6xf32> to vector<4x6xf32>
    %cst_50 = arith.constant dense<0.000000e+00> : vector<96x6xf32>
    %50 = tpu.matmul %47, %49, %cst_50 {dimension_numbers = #tpu.dot_dimension_numbers<[1], [0], [0], [1], [0, 0, 1, 1], [], []>} : vector<96x4xf32>, vector<4x6xf32>, vector<96x6xf32> -> vector<96x6xf32>
    %51 = arith.addf %45, %50 : vector<96x6xf32>
    %c1_51 = arith.constant 1 : index
    %c2_52 = arith.constant 2 : index
    %c0_53 = arith.constant 0 : index
    %52 = vector.load %arg12[%c1_51, %c2_52, %c0_53] : memref<8x18x4xf32, #tpu.memory_space<vmem>>, vector<6x16x4xf32>
    %53 = vector.shape_cast %52 : vector<6x16x4xf32> to vector<96x4xf32>
    %c0_54 = arith.constant 0 : index
    %c20 = arith.constant 20 : index
    %c0_55 = arith.constant 0 : index
    %54 = vector.load %arg7[%c0_54, %c20, %c0_55] : memref<1x36x6xf32, #tpu.memory_space<vmem>>, vector<1x4x6xf32>
    %55 = vector.shape_cast %54 : vector<1x4x6xf32> to vector<4x6xf32>
    %cst_56 = arith.constant dense<0.000000e+00> : vector<96x6xf32>
    %56 = tpu.matmul %53, %55, %cst_56 {dimension_numbers = #tpu.dot_dimension_numbers<[1], [0], [0], [1], [0, 0, 1, 1], [], []>} : vector<96x4xf32>, vector<4x6xf32>, vector<96x6xf32> -> vector<96x6xf32>
    %57 = arith.addf %51, %56 : vector<96x6xf32>
    %c2_57 = arith.constant 2 : index
    %c0_58 = arith.constant 0 : index
    %c0_59 = arith.constant 0 : index
    %58 = vector.load %arg12[%c2_57, %c0_58, %c0_59] : memref<8x18x4xf32, #tpu.memory_space<vmem>>, vector<6x16x4xf32>
    %59 = vector.shape_cast %58 : vector<6x16x4xf32> to vector<96x4xf32>
    %c0_60 = arith.constant 0 : index
    %c24 = arith.constant 24 : index
    %c0_61 = arith.constant 0 : index
    %60 = vector.load %arg7[%c0_60, %c24, %c0_61] : memref<1x36x6xf32, #tpu.memory_space<vmem>>, vector<1x4x6xf32>
    %61 = vector.shape_cast %60 : vector<1x4x6xf32> to vector<4x6xf32>
    %cst_62 = arith.constant dense<0.000000e+00> : vector<96x6xf32>
    %62 = tpu.matmul %59, %61, %cst_62 {dimension_numbers = #tpu.dot_dimension_numbers<[1], [0], [0], [1], [0, 0, 1, 1], [], []>} : vector<96x4xf32>, vector<4x6xf32>, vector<96x6xf32> -> vector<96x6xf32>
    %63 = arith.addf %57, %62 : vector<96x6xf32>
    %c2_63 = arith.constant 2 : index
    %c1_64 = arith.constant 1 : index
    %c0_65 = arith.constant 0 : index
    %64 = vector.load %arg12[%c2_63, %c1_64, %c0_65] : memref<8x18x4xf32, #tpu.memory_space<vmem>>, vector<6x16x4xf32>
    %65 = vector.shape_cast %64 : vector<6x16x4xf32> to vector<96x4xf32>
    %c0_66 = arith.constant 0 : index
    %c28 = arith.constant 28 : index
    %c0_67 = arith.constant 0 : index
    %66 = vector.load %arg7[%c0_66, %c28, %c0_67] : memref<1x36x6xf32, #tpu.memory_space<vmem>>, vector<1x4x6xf32>
    %67 = vector.shape_cast %66 : vector<1x4x6xf32> to vector<4x6xf32>
    %cst_68 = arith.constant dense<0.000000e+00> : vector<96x6xf32>
    %68 = tpu.matmul %65, %67, %cst_68 {dimension_numbers = #tpu.dot_dimension_numbers<[1], [0], [0], [1], [0, 0, 1, 1], [], []>} : vector<96x4xf32>, vector<4x6xf32>, vector<96x6xf32> -> vector<96x6xf32>
    %69 = arith.addf %63, %68 : vector<96x6xf32>
    %c2_69 = arith.constant 2 : index
    %c2_70 = arith.constant 2 : index
    %c0_71 = arith.constant 0 : index
    %70 = vector.load %arg12[%c2_69, %c2_70, %c0_71] : memref<8x18x4xf32, #tpu.memory_space<vmem>>, vector<6x16x4xf32>
    %71 = vector.shape_cast %70 : vector<6x16x4xf32> to vector<96x4xf32>
    %c0_72 = arith.constant 0 : index
    %c32 = arith.constant 32 : index
    %c0_73 = arith.constant 0 : index
    %72 = vector.load %arg7[%c0_72, %c32, %c0_73] : memref<1x36x6xf32, #tpu.memory_space<vmem>>, vector<1x4x6xf32>
    %73 = vector.shape_cast %72 : vector<1x4x6xf32> to vector<4x6xf32>
    %cst_74 = arith.constant dense<0.000000e+00> : vector<96x6xf32>
    %74 = tpu.matmul %71, %73, %cst_74 {dimension_numbers = #tpu.dot_dimension_numbers<[1], [0], [0], [1], [0, 0, 1, 1], [], []>} : vector<96x4xf32>, vector<4x6xf32>, vector<96x6xf32> -> vector<96x6xf32>
    %75 = arith.addf %69, %74 : vector<96x6xf32>
    %76 = vector.broadcast %20 : vector<1x6xf32> to vector<96x6xf32>
    %77 = arith.addf %75, %76 : vector<96x6xf32>
    %cst_75 = arith.constant 0.000000e+00 : f32
    %78 = vector.broadcast %cst_75 : f32 to vector<96x6xf32>
    %79 = arith.cmpf oge, %77, %78 : vector<96x6xf32>
    %cst_76 = arith.constant 2.000000e-01 : f32
    %80 = vector.broadcast %cst_76 : f32 to vector<96x6xf32>
    %81 = arith.mulf %80, %77 : vector<96x6xf32>
    %82 = arith.select %79, %77, %81 : vector<96x6xi1>, vector<96x6xf32>
    %83 = vector.shape_cast %82 : vector<96x6xf32> to vector<6x16x6xf32>
    %c0_77 = arith.constant 0 : index
    %c1_78 = arith.constant 1 : index
    %c0_79 = arith.constant 0 : index
    %84 = vector.load %arg13[%c0_77, %c1_78, %c0_79] : memref<6x18x6xf32, #tpu.memory_space<vmem>>, vector<6x16x6xf32>
    tpu.vector_store %arg13[%c0_77, %c1_78, %c0_79], %83 {strides = array<i32>} : memref<6x18x6xf32, #tpu.memory_space<vmem>>, vector<6x16x6xf32>,
    %cst_80 = arith.constant 0.000000e+00 : f32
    %85 = vector.broadcast %cst_80 : f32 to vector<6x1x6xf32>
    %c0_81 = arith.constant 0 : index
    %c0_82 = arith.constant 0 : index
    %c0_83 = arith.constant 0 : index
    %86 = vector.load %arg13[%c0_81, %c0_82, %c0_83] : memref<6x18x6xf32, #tpu.memory_space<vmem>>, vector<6x1x6xf32>
    tpu.vector_store %arg13[%c0_81, %c0_82, %c0_83], %85 {strides = array<i32>} : memref<6x18x6xf32, #tpu.memory_space<vmem>>, vector<6x1x6xf32>,
    %cst_84 = arith.constant 0.000000e+00 : f32
    %87 = vector.broadcast %cst_84 : f32 to vector<6x1x6xf32>
    %c0_85 = arith.constant 0 : index
    %c17_86 = arith.constant 17 : index
    %c0_87 = arith.constant 0 : index
    %88 = vector.load %arg13[%c0_85, %c17_86, %c0_87] : memref<6x18x6xf32, #tpu.memory_space<vmem>>, vector<6x1x6xf32>
    tpu.vector_store %arg13[%c0_85, %c17_86, %c0_87], %87 {strides = array<i32>} : memref<6x18x6xf32, #tpu.memory_space<vmem>>, vector<6x1x6xf32>,
    %c0_i32_88 = arith.constant 0 : i32
    %89 = arith.cmpi eq, %arg1, %c0_i32_88 : i32
    %90 = arith.extui %89 : i1 to i32
    %c0_i32_89 = arith.constant 0 : i32
    %91 = arith.cmpi ne, %90, %c0_i32_89 : i32
    scf.if %91 {
      %cst_159 = arith.constant 0.000000e+00 : f32
      %162 = vector.broadcast %cst_159 : f32 to vector<1x18x6xf32>
      %c0_160 = arith.constant 0 : index
      %c0_161 = arith.constant 0 : index
      %c0_162 = arith.constant 0 : index
      %163 = vector.load %arg13[%c0_160, %c0_161, %c0_162] : memref<6x18x6xf32, #tpu.memory_space<vmem>>, vector<1x18x6xf32>
      tpu.vector_store %arg13[%c0_160, %c0_161, %c0_162], %162 {strides = array<i32>} : memref<6x18x6xf32, #tpu.memory_space<vmem>>, vector<1x18x6xf32>,
    } else {
    }
    %c3_i32_90 = arith.constant 3 : i32
    %92 = arith.cmpi eq, %arg1, %c3_i32_90 : i32
    %93 = arith.extui %92 : i1 to i32
    %c0_i32_91 = arith.constant 0 : i32
    %94 = arith.cmpi ne, %93, %c0_i32_91 : i32
    scf.if %94 {
      %cst_159 = arith.constant 0.000000e+00 : f32
      %162 = vector.broadcast %cst_159 : f32 to vector<1x18x6xf32>
      %c5 = arith.constant 5 : index
      %c0_160 = arith.constant 0 : index
      %c0_161 = arith.constant 0 : index
      %163 = vector.load %arg13[%c5, %c0_160, %c0_161] : memref<6x18x6xf32, #tpu.memory_space<vmem>>, vector<1x18x6xf32>
      tpu.vector_store %arg13[%c5, %c0_160, %c0_161], %162 {strides = array<i32>} : memref<6x18x6xf32, #tpu.memory_space<vmem>>, vector<1x18x6xf32>,
    } else {
    }
    %c0_92 = arith.constant 0 : index
    %c0_93 = arith.constant 0 : index
    %c0_94 = arith.constant 0 : index
    %95 = vector.load %arg10[%c0_92, %c0_93, %c0_94] : memref<1x1x8xf32, #tpu.memory_space<vmem>>, vector<1x1x8xf32>
    %96 = vector.shape_cast %95 : vector<1x1x8xf32> to vector<1x8xf32>
    %cst_95 = arith.constant 0.000000e+00 : f32
    %97 = vector.broadcast %cst_95 : f32 to vector<64x8xf32>
    %c0_96 = arith.constant 0 : index
    %c0_97 = arith.constant 0 : index
    %c0_98 = arith.constant 0 : index
    %98 = vector.load %arg13[%c0_96, %c0_97, %c0_98] : memref<6x18x6xf32, #tpu.memory_space<vmem>>, vector<4x16x6xf32>
    %99 = vector.shape_cast %98 : vector<4x16x6xf32> to vector<64x6xf32>
    %c0_99 = arith.constant 0 : index
    %c0_100 = arith.constant 0 : index
    %c0_101 = arith.constant 0 : index
    %100 = vector.load %arg9[%c0_99, %c0_100, %c0_101] : memref<1x54x8xf32, #tpu.memory_space<vmem>>, vector<1x6x8xf32>
    %101 = vector.shape_cast %100 : vector<1x6x8xf32> to vector<6x8xf32>
    %cst_102 = arith.constant dense<0.000000e+00> : vector<64x8xf32>
    %102 = tpu.matmul %99, %101, %cst_102 {dimension_numbers = #tpu.dot_dimension_numbers<[1], [0], [0], [1], [0, 0, 1, 1], [], []>} : vector<64x6xf32>, vector<6x8xf32>, vector<64x8xf32> -> vector<64x8xf32>
    %103 = arith.addf %97, %102 : vector<64x8xf32>
    %c0_103 = arith.constant 0 : index
    %c1_104 = arith.constant 1 : index
    %c0_105 = arith.constant 0 : index
    %104 = vector.load %arg13[%c0_103, %c1_104, %c0_105] : memref<6x18x6xf32, #tpu.memory_space<vmem>>, vector<4x16x6xf32>
    %105 = vector.shape_cast %104 : vector<4x16x6xf32> to vector<64x6xf32>
    %c0_106 = arith.constant 0 : index
    %c6 = arith.constant 6 : index
    %c0_107 = arith.constant 0 : index
    %106 = vector.load %arg9[%c0_106, %c6, %c0_107] : memref<1x54x8xf32, #tpu.memory_space<vmem>>, vector<1x6x8xf32>
    %107 = vector.shape_cast %106 : vector<1x6x8xf32> to vector<6x8xf32>
    %cst_108 = arith.constant dense<0.000000e+00> : vector<64x8xf32>
    %108 = tpu.matmul %105, %107, %cst_108 {dimension_numbers = #tpu.dot_dimension_numbers<[1], [0], [0], [1], [0, 0, 1, 1], [], []>} : vector<64x6xf32>, vector<6x8xf32>, vector<64x8xf32> -> vector<64x8xf32>
    %109 = arith.addf %103, %108 : vector<64x8xf32>
    %c0_109 = arith.constant 0 : index
    %c2_110 = arith.constant 2 : index
    %c0_111 = arith.constant 0 : index
    %110 = vector.load %arg13[%c0_109, %c2_110, %c0_111] : memref<6x18x6xf32, #tpu.memory_space<vmem>>, vector<4x16x6xf32>
    %111 = vector.shape_cast %110 : vector<4x16x6xf32> to vector<64x6xf32>
    %c0_112 = arith.constant 0 : index
    %c12_113 = arith.constant 12 : index
    %c0_114 = arith.constant 0 : index
    %112 = vector.load %arg9[%c0_112, %c12_113, %c0_114] : memref<1x54x8xf32, #tpu.memory_space<vmem>>, vector<1x6x8xf32>
    %113 = vector.shape_cast %112 : vector<1x6x8xf32> to vector<6x8xf32>
    %cst_115 = arith.constant dense<0.000000e+00> : vector<64x8xf32>
    %114 = tpu.matmul %111, %113, %cst_115 {dimension_numbers = #tpu.dot_dimension_numbers<[1], [0], [0], [1], [0, 0, 1, 1], [], []>} : vector<64x6xf32>, vector<6x8xf32>, vector<64x8xf32> -> vector<64x8xf32>
    %115 = arith.addf %109, %114 : vector<64x8xf32>
    %c1_116 = arith.constant 1 : index
    %c0_117 = arith.constant 0 : index
    %c0_118 = arith.constant 0 : index
    %116 = vector.load %arg13[%c1_116, %c0_117, %c0_118] : memref<6x18x6xf32, #tpu.memory_space<vmem>>, vector<4x16x6xf32>
    %117 = vector.shape_cast %116 : vector<4x16x6xf32> to vector<64x6xf32>
    %c0_119 = arith.constant 0 : index
    %c18 = arith.constant 18 : index
    %c0_120 = arith.constant 0 : index
    %118 = vector.load %arg9[%c0_119, %c18, %c0_120] : memref<1x54x8xf32, #tpu.memory_space<vmem>>, vector<1x6x8xf32>
    %119 = vector.shape_cast %118 : vector<1x6x8xf32> to vector<6x8xf32>
    %cst_121 = arith.constant dense<0.000000e+00> : vector<64x8xf32>
    %120 = tpu.matmul %117, %119, %cst_121 {dimension_numbers = #tpu.dot_dimension_numbers<[1], [0], [0], [1], [0, 0, 1, 1], [], []>} : vector<64x6xf32>, vector<6x8xf32>, vector<64x8xf32> -> vector<64x8xf32>
    %121 = arith.addf %115, %120 : vector<64x8xf32>
    %c1_122 = arith.constant 1 : index
    %c1_123 = arith.constant 1 : index
    %c0_124 = arith.constant 0 : index
    %122 = vector.load %arg13[%c1_122, %c1_123, %c0_124] : memref<6x18x6xf32, #tpu.memory_space<vmem>>, vector<4x16x6xf32>
    %123 = vector.shape_cast %122 : vector<4x16x6xf32> to vector<64x6xf32>
    %c0_125 = arith.constant 0 : index
    %c24_126 = arith.constant 24 : index
    %c0_127 = arith.constant 0 : index
    %124 = vector.load %arg9[%c0_125, %c24_126, %c0_127] : memref<1x54x8xf32, #tpu.memory_space<vmem>>, vector<1x6x8xf32>
    %125 = vector.shape_cast %124 : vector<1x6x8xf32> to vector<6x8xf32>
    %cst_128 = arith.constant dense<0.000000e+00> : vector<64x8xf32>
    %126 = tpu.matmul %123, %125, %cst_128 {dimension_numbers = #tpu.dot_dimension_numbers<[1], [0], [0], [1], [0, 0, 1, 1], [], []>} : vector<64x6xf32>, vector<6x8xf32>, vector<64x8xf32> -> vector<64x8xf32>
    %127 = arith.addf %121, %126 : vector<64x8xf32>
    %c1_129 = arith.constant 1 : index
    %c2_130 = arith.constant 2 : index
    %c0_131 = arith.constant 0 : index
    %128 = vector.load %arg13[%c1_129, %c2_130, %c0_131] : memref<6x18x6xf32, #tpu.memory_space<vmem>>, vector<4x16x6xf32>
    %129 = vector.shape_cast %128 : vector<4x16x6xf32> to vector<64x6xf32>
    %c0_132 = arith.constant 0 : index
    %c30 = arith.constant 30 : index
    %c0_133 = arith.constant 0 : index
    %130 = vector.load %arg9[%c0_132, %c30, %c0_133] : memref<1x54x8xf32, #tpu.memory_space<vmem>>, vector<1x6x8xf32>
    %131 = vector.shape_cast %130 : vector<1x6x8xf32> to vector<6x8xf32>
    %cst_134 = arith.constant dense<0.000000e+00> : vector<64x8xf32>
    %132 = tpu.matmul %129, %131, %cst_134 {dimension_numbers = #tpu.dot_dimension_numbers<[1], [0], [0], [1], [0, 0, 1, 1], [], []>} : vector<64x6xf32>, vector<6x8xf32>, vector<64x8xf32> -> vector<64x8xf32>
    %133 = arith.addf %127, %132 : vector<64x8xf32>
    %c2_135 = arith.constant 2 : index
    %c0_136 = arith.constant 0 : index
    %c0_137 = arith.constant 0 : index
    %134 = vector.load %arg13[%c2_135, %c0_136, %c0_137] : memref<6x18x6xf32, #tpu.memory_space<vmem>>, vector<4x16x6xf32>
    %135 = vector.shape_cast %134 : vector<4x16x6xf32> to vector<64x6xf32>
    %c0_138 = arith.constant 0 : index
    %c36 = arith.constant 36 : index
    %c0_139 = arith.constant 0 : index
    %136 = vector.load %arg9[%c0_138, %c36, %c0_139] : memref<1x54x8xf32, #tpu.memory_space<vmem>>, vector<1x6x8xf32>
    %137 = vector.shape_cast %136 : vector<1x6x8xf32> to vector<6x8xf32>
    %cst_140 = arith.constant dense<0.000000e+00> : vector<64x8xf32>
    %138 = tpu.matmul %135, %137, %cst_140 {dimension_numbers = #tpu.dot_dimension_numbers<[1], [0], [0], [1], [0, 0, 1, 1], [], []>} : vector<64x6xf32>, vector<6x8xf32>, vector<64x8xf32> -> vector<64x8xf32>
    %139 = arith.addf %133, %138 : vector<64x8xf32>
    %c2_141 = arith.constant 2 : index
    %c1_142 = arith.constant 1 : index
    %c0_143 = arith.constant 0 : index
    %140 = vector.load %arg13[%c2_141, %c1_142, %c0_143] : memref<6x18x6xf32, #tpu.memory_space<vmem>>, vector<4x16x6xf32>
    %141 = vector.shape_cast %140 : vector<4x16x6xf32> to vector<64x6xf32>
    %c0_144 = arith.constant 0 : index
    %c42 = arith.constant 42 : index
    %c0_145 = arith.constant 0 : index
    %142 = vector.load %arg9[%c0_144, %c42, %c0_145] : memref<1x54x8xf32, #tpu.memory_space<vmem>>, vector<1x6x8xf32>
    %143 = vector.shape_cast %142 : vector<1x6x8xf32> to vector<6x8xf32>
    %cst_146 = arith.constant dense<0.000000e+00> : vector<64x8xf32>
    %144 = tpu.matmul %141, %143, %cst_146 {dimension_numbers = #tpu.dot_dimension_numbers<[1], [0], [0], [1], [0, 0, 1, 1], [], []>} : vector<64x6xf32>, vector<6x8xf32>, vector<64x8xf32> -> vector<64x8xf32>
    %145 = arith.addf %139, %144 : vector<64x8xf32>
    %c2_147 = arith.constant 2 : index
    %c2_148 = arith.constant 2 : index
    %c0_149 = arith.constant 0 : index
    %146 = vector.load %arg13[%c2_147, %c2_148, %c0_149] : memref<6x18x6xf32, #tpu.memory_space<vmem>>, vector<4x16x6xf32>
    %147 = vector.shape_cast %146 : vector<4x16x6xf32> to vector<64x6xf32>
    %c0_150 = arith.constant 0 : index
    %c48 = arith.constant 48 : index
    %c0_151 = arith.constant 0 : index
    %148 = vector.load %arg9[%c0_150, %c48, %c0_151] : memref<1x54x8xf32, #tpu.memory_space<vmem>>, vector<1x6x8xf32>
    %149 = vector.shape_cast %148 : vector<1x6x8xf32> to vector<6x8xf32>
    %cst_152 = arith.constant dense<0.000000e+00> : vector<64x8xf32>
    %150 = tpu.matmul %147, %149, %cst_152 {dimension_numbers = #tpu.dot_dimension_numbers<[1], [0], [0], [1], [0, 0, 1, 1], [], []>} : vector<64x6xf32>, vector<6x8xf32>, vector<64x8xf32> -> vector<64x8xf32>
    %151 = arith.addf %145, %150 : vector<64x8xf32>
    %152 = vector.broadcast %96 : vector<1x8xf32> to vector<64x8xf32>
    %153 = arith.addf %151, %152 : vector<64x8xf32>
    %cst_153 = arith.constant 0.000000e+00 : f32
    %154 = vector.broadcast %cst_153 : f32 to vector<64x8xf32>
    %155 = arith.cmpf oge, %153, %154 : vector<64x8xf32>
    %cst_154 = arith.constant 2.000000e-01 : f32
    %156 = vector.broadcast %cst_154 : f32 to vector<64x8xf32>
    %157 = arith.mulf %156, %153 : vector<64x8xf32>
    %158 = arith.select %155, %153, %157 : vector<64x8xi1>, vector<64x8xf32>
    %159 = vector.shape_cast %158 : vector<64x8xf32> to vector<4x16x8xf32>
    %160 = vector.shape_cast %159 : vector<4x16x8xf32> to vector<1x4x16x8xf32>
    %c0_155 = arith.constant 0 : index
    %c0_156 = arith.constant 0 : index
    %c0_157 = arith.constant 0 : index
    %c0_158 = arith.constant 0 : index
    %161 = vector.load %arg11[%c0_155, %c0_156, %c0_157, %c0_158] : memref<1x4x16x8xf32, #tpu.memory_space<vmem>>, vector<1x4x16x8xf32>
    tpu.vector_store %arg11[%c0_155, %c0_156, %c0_157, %c0_158], %160 {strides = array<i32>} : memref<1x4x16x8xf32, #tpu.memory_space<vmem>>, vector<1x4x16x8xf32>,
    return
  }
  func.func @transform_0(%arg0: i32, %arg1: i32) -> (i32, i32, i32, i32) {
    %c0_i32 = arith.constant 0 : i32
    %c0_i32_0 = arith.constant 0 : i32
    %c0_i32_1 = arith.constant 0 : i32
    return %arg0, %arg1, %c0_i32, %c0_i32_0 : i32, i32, i32, i32
  }
  func.func @transform_1(%arg0: i32, %arg1: i32) -> (i32, i32, i32, i32) {
    %c4_i32 = arith.constant 4 : i32
    %0 = arith.muli %arg1, %c4_i32 : i32
    %c2_i32 = arith.constant 2 : i32
    %1 = arith.subi %0, %c2_i32 : i32
    %c0_i32 = arith.constant 0 : i32
    %2 = arith.maxsi %1, %c0_i32 : i32
    %c0_i32_0 = arith.constant 0 : i32
    %c0_i32_1 = arith.constant 0 : i32
    %c0_i32_2 = arith.constant 0 : i32
    return %arg0, %2, %c0_i32_0, %c0_i32_1 : i32, i32, i32, i32
  }
  func.func @transform_2(%arg0: i32, %arg1: i32) -> (i32, i32, i32, i32) {
    %c4_i32 = arith.constant 4 : i32
    %0 = arith.muli %arg1, %c4_i32 : i32
    %c1_i32 = arith.constant 1 : i32
    %1 = arith.subi %0, %c1_i32 : i32
    %c0_i32 = arith.constant 0 : i32
    %2 = arith.maxsi %1, %c0_i32 : i32
    %c0_i32_0 = arith.constant 0 : i32
    %c0_i32_1 = arith.constant 0 : i32
    %c0_i32_2 = arith.constant 0 : i32
    return %arg0, %2, %c0_i32_0, %c0_i32_1 : i32, i32, i32, i32
  }
  func.func @transform_3(%arg0: i32, %arg1: i32) -> (i32, i32, i32, i32) {
    %c4_i32 = arith.constant 4 : i32
    %0 = arith.muli %arg1, %c4_i32 : i32
    %c4_i32_0 = arith.constant 4 : i32
    %1 = arith.addi %0, %c4_i32_0 : i32
    %c15_i32 = arith.constant 15 : i32
    %2 = arith.minsi %1, %c15_i32 : i32
    %c0_i32 = arith.constant 0 : i32
    %c0_i32_1 = arith.constant 0 : i32
    %c0_i32_2 = arith.constant 0 : i32
    return %arg0, %2, %c0_i32, %c0_i32_1 : i32, i32, i32, i32
  }
  func.func @transform_4(%arg0: i32, %arg1: i32) -> (i32, i32, i32, i32) {
    %c4_i32 = arith.constant 4 : i32
    %0 = arith.muli %arg1, %c4_i32 : i32
    %c4_i32_0 = arith.constant 4 : i32
    %1 = arith.addi %0, %c4_i32_0 : i32
    %c1_i32 = arith.constant 1 : i32
    %2 = arith.addi %1, %c1_i32 : i32
    %c15_i32 = arith.constant 15 : i32
    %3 = arith.minsi %2, %c15_i32 : i32
    %c0_i32 = arith.constant 0 : i32
    %c0_i32_1 = arith.constant 0 : i32
    %c0_i32_2 = arith.constant 0 : i32
    return %arg0, %3, %c0_i32, %c0_i32_1 : i32, i32, i32, i32
  }
  func.func @transform_5(%arg0: i32, %arg1: i32) -> (i32, i32, i32) {
    %c0_i32 = arith.constant 0 : i32
    %c0_i32_0 = arith.constant 0 : i32
    %c0_i32_1 = arith.constant 0 : i32
    return %arg0, %c0_i32, %c0_i32_0 : i32, i32, i32
  }
  func.func @transform_6(%arg0: i32, %arg1: i32) -> (i32, i32, i32) {
    %c0_i32 = arith.constant 0 : i32
    %c0_i32_0 = arith.constant 0 : i32
    %c0_i32_1 = arith.constant 0 : i32
    return %arg0, %c0_i32, %c0_i32_0 : i32, i32, i32
  }
  func.func @transform_7(%arg0: i32, %arg1: i32) -> (i32, i32, i32) {
    %c0_i32 = arith.constant 0 : i32
    %c0_i32_0 = arith.constant 0 : i32
    %c0_i32_1 = arith.constant 0 : i32
    return %arg0, %c0_i32, %c0_i32_0 : i32, i32, i32
  }
  func.func @transform_8(%arg0: i32, %arg1: i32) -> (i32, i32, i32) {
    %c0_i32 = arith.constant 0 : i32
    %c0_i32_0 = arith.constant 0 : i32
    %c0_i32_1 = arith.constant 0 : i32
    return %arg0, %c0_i32, %c0_i32_0 : i32, i32, i32
  }
  func.func @transform_9(%arg0: i32, %arg1: i32) -> (i32, i32, i32, i32) {
    %c0_i32 = arith.constant 0 : i32
    %c0_i32_0 = arith.constant 0 : i32
    %c0_i32_1 = arith.constant 0 : i32
    return %arg0, %arg1, %c0_i32, %c0_i32_0 : i32, i32, i32, i32
  }
}

</mosaic_0001>

<bundles_post_ra>
// kernel: modnet_basic_block.1
= control target key start
LH: loop header
LB: loop body
LE: loop exit
PB: predicated region body
PF: predicated region fallthrough
CT: control target
= control target key end

     0   :  { %s3336_s30 = smov 0   ;;  %s3338_s10 = smov 0   ;;  %s4099_s0 = inlined_call_operand.vmem [shape: f32[2,16,16,4], index: 0, kind: input, shape index: {}, may-alias: {0,1,2,3,4}]   ;;  %s4100_s1 = inlined_call_operand.vmem [shape: f32[2,16,16,4], index: 1, kind: input, shape index: {}, may-alias: {0,1,2,3,4}]   ;;  %s4101_s2 = inlined_call_operand.vmem [shape: f32[2,16,16,4], index: 2, kind: input, shape index: {}, may-alias: {0,1,2,3,4}]   ;;  %s4102_s3 = inlined_call_operand.vmem [shape: f32[2,16,16,4], index: 3, kind: input, shape index: {}, may-alias: {0,1,2,3,4}]   ;;  %s4103_s4 = inlined_call_operand.vmem [shape: f32[2,16,16,4], index: 4, kind: input, shape index: {}, may-alias: {0,1,2,3,4}]   ;;  %s4104_s5 = inlined_call_operand.vmem [shape: f32[2,36,6], index: 5, kind: input, shape index: {}]   ;;  %s4105_s6 = inlined_call_operand.vmem [shape: f32[2,1,6], index: 6, kind: input, shape index: {}]   ;;  %s4106_s7 = inlined_call_operand.vmem [shape: f32[2,54,8], index: 7, kind: input, shape index: {}]   ;;  %s4107_s8 = inlined_call_operand.vmem [shape: f32[2,1,8], index: 8, kind: input, shape index: {}]   ;;  %s4108_s9 = inlined_call_operand.vmem [shape: f32[2,16,16,8], index: 9, kind: output, shape index: {}]  }
   0x1   :  { %4113 = sst [smem:[#allocation9_spill]] %s4099_s0  ;;  %s3340_s11 = smov 0  }
   0x2   :  { %4114 = sst [smem:[#allocation10_spill]] %s4100_s1  ;;  %s3342_s12 = smov 0  }
   0x3   :  { %4115 = sst [smem:[#allocation11_spill]] %s4101_s2  ;;  %s3344_s13 = smov 0  }
   0x4   :  { %4116 = sst [smem:[#allocation12_spill]] %s4104_s5 }
   0x5   :  { %4117 = sst [smem:[#allocation13_spill]] %s4107_s8 }
   0x6 LB: > { %4118 = sst [smem:[#allocation4_spill]] %s3271_s11  ;;  %s28_s14 = sadd.s32 1, %s3271_s11  ;;  %s3279_s13 = sphi %s3344_s13, %s19_s13   ;;  %s3275_s12 = sphi %s3342_s12, %s4138_s12   ;;  %s3271_s11 = sphi %s3340_s11, %s4137_s11   ;;  %s3267_s10 = sphi %s3338_s10, %s4136_s10   ;;  %s3263_s30 = sphi %s3336_s30, %s4135_s30  }
   0x7   : > { %4119 = sst [smem:[#allocation5_spill]] %s3275_s12  ;;  %s31_s15 = sadd.s32 1, %s3275_s12 }
   0x8   : > { %4120 = sst [smem:[#allocation6_spill]] %s3279_s13  ;;  %p29_p0 = scmp.ge.s32.totalorder %s28_s14, 4 }
   0x9   : > { %p2934_p1 = scmp.ge.s32.totalorder %s3279_s13, 1  ;;  %p473_p2 = scmp.lt.s32.totalorder %s3279_s13, 9 }
   0xa   : > { %s4140_s14 = smov (%p29_p0, %s28_s14), 0  ;;  %s4142_s15 = smov (!%p29_p0, %s31_s15), %s3275_s12 }
   0xb   : > { %4121 = sst [smem:[#allocation7_spill]] %s4140_s14  ;;  %p474_p3 = pnand %p2934_p1, %p473_p2 }
   0xc   : > { %p33_p4 = scmp.ge.s32.totalorder %s4142_s15, 2  ;;  %s3369_s16 = sshll.u32 (!%p474_p3), %s3263_s30, 2 }
   0xd   : > { %477 = sbr.rel (%p474_p3) target bundleno = 852 (0x354), region = 56  ;;  %p588_p5 = scmp.lt.s32.totalorder (!%p474_p3), %s3267_s10, 1 }
   0xe   : > { %s4144_s15 = smov (%p33_p4, %s4142_s15), 0  ;;  %p590_p6 = scmp.lt.s32.totalorder (!%p474_p3), %s3369_s16, 15 }
   0xf   : > { %4122 = sst [smem:[#allocation8_spill]] %s4144_s15  ;;  %s2940_s17 = sadd.s32 (!%p474_p3), 4294967294, %s3369_s16 }
  0x10   : > { %p600_p7 = scmp.gt.s32.totalorder (!%p474_p3), %s2940_s17, 0  ;;  %p2941_p8 = scmp.lt.s32.totalorder (!%p474_p3), %s2940_s17, 15 }
  0x11   : > { %s2950_s22 = sadd.s32 (!%p474_p3), 4294967295, %s3369_s16  ;;  %s4123_s0 = sld [smem:[#allocation9_spill]] (!%p474_p3) }
  0x12   : > { %vm693_vm0 = vcmask 24576   ;;  %v3281_v0 = vmov 0.0   ;;  %s4146_s10 = smov (!%p588_p5, %s3267_s10), 1  ;;  %p617_p9 = scmp.gt.s32.totalorder %s2950_s22, 0  ;;  %vm719_vm1 = vcmask 31744  }
  0x13   : > { %694 = vst.msk [vmem:[#allocation2] sm:$0x1] %vm693_vm0, %v3281_v0  ;;  %s591_s18 = scalar_select %p590_p6, %s3369_s16, 15 }
  0x14   : > { %695 = vst.msk [vmem:[#allocation2 + $0x18] sm:$0x1] %vm693_vm0, %v3281_v0  ;;  %s3385_s19 = sshll.u32 %s4146_s10, 5  ;;  %p2951_p10 = scmp.lt.s32.totalorder %s2950_s22, 15 }
  0x15   : > { %696 = vst.msk [vmem:[#allocation2 + $0x30] sm:$0x1] %vm693_vm0, %v3281_v0  ;;  %s2936_s20 = sshll.u32 %s591_s18, 1  ;;  %s4148_s22 = smov (!%p617_p9, %s2950_s22), 0 }
  0x16   : > { %697 = vst.msk [vmem:[#allocation2 + $0x48] sm:$0x1] %vm693_vm0, %v3281_v0  ;;  %s3392_s21 = sadd.s32 %s3385_s19, %s2936_s20  ;;  %s4152_s22 = smov (!%p2951_p10, %s4148_s22), 15 }
  0x17   : > { %698 = vst.msk [vmem:[#allocation2 + $0x60] sm:$0x1] %vm693_vm0, %v3281_v0  ;;  %s4109_s23 = sshll.u32 %s3392_s21, 3  ;;  %s633_s29 = sadd.s32 4, %s3369_s16 }
  0x18   : > { %699 = vst.msk [vmem:[#allocation2 + $0x78] sm:$0x1] %vm693_vm0, %v3281_v0  ;;  %s3405_s26 = scalar_lea.vmem %s4123_s0, %s4109_s23  ;;  %s2956_s20 = sshll.u32 %s4152_s22, 1 }
  0x19   : > { %700 = vst.msk [vmem:[#allocation2 + $0x90] sm:$0x1] %vm693_vm0, %v3281_v0  ;;  %s601_s27 = scalar_select %p600_p7, %s2940_s17, 0  ;;  %v710_v1 = vld [vmem:[%s3405_s26] sm:$0xff]  ;;  %v711_v2 = vld [vmem:[%s3405_s26 + $0x8] sm:$0xff]  ;;  %v712_v3 = vld [vmem:[%s3405_s26 + $0x10] sm:$0xff] }
  0x1a   : > { %701 = vst.msk [vmem:[#allocation2 + $0xa8] sm:$0x1] %vm693_vm0, %v3281_v0  ;;  %s625_s24 = sadd.s32 %s2956_s20, %s3385_s19  ;;  %s4124_s1 = sld [smem:[#allocation10_spill]]  ;;  %v713_v4 = vld [vmem:[%s3405_s26 + $0x18] sm:$0xff]  ;;  %v714_v5 = vld [vmem:[%s3405_s26 + $0x20] sm:$0xff]  ;;  %v715_v6 = vld [vmem:[%s3405_s26 + $0x28] sm:$0xff] }
  0x1b   : > { %702 = vst.msk [vmem:[#allocation2 + $0x11] sm:$0x1] %vm693_vm0, %v3281_v0  ;;  %s4150_s27 = smov (!%p2941_p8, %s601_s27), 15  ;;  %s2958_s22 = sshll.u32 %s625_s24, 3  ;;  %v716_v7 = vld [vmem:[%s3405_s26 + $0x30] sm:$0xff]  ;;  %v717_v8 = vld [vmem:[%s3405_s26 + $0x38] sm:$0xff] }
  0x1c   : > { %703 = vst.msk [vmem:[#allocation2 + $0x29] sm:$0x1] %vm693_vm0, %v3281_v0  ;;  %s2946_s28 = sshll.u32 %s4150_s27, 1  ;;  %s4125_s2 = sld [smem:[#allocation11_spill]] }
  0x1d   : > { %704 = vst.msk [vmem:[#allocation2 + $0x41] sm:$0x1] %vm693_vm0, %v3281_v0  ;;  %s608_s18 = sadd.s32 %s2946_s28, %s3385_s19  ;;  %p3441_p11 = scmp.lt.s32.totalorder %s633_s29, 15 }
  0x1e   : > { %705 = vst.msk [vmem:[#allocation2 + $0x59] sm:$0x1] %vm693_vm0, %v3281_v0  ;;  %s2948_s17 = sshll.u32 %s608_s18, 3  ;;  %s650_s20 = sadd.s32 5, %s3369_s16 }
  0x1f   : > { %706 = vst.msk [vmem:[#allocation2 + $0x71] sm:$0x1] %vm693_vm0, %v3281_v0  ;;  %s4154_s29 = smov (!%p3441_p11, %s633_s29), 15  ;;  %p3455_p12 = scmp.lt.s32.totalorder %s650_s20, 15 }
  0x20   : > { %707 = vst.msk [vmem:[#allocation2 + $0x89] sm:$0x1] %vm693_vm0, %v3281_v0  ;;  %s3433_s28 = scalar_lea.vmem %s4124_s1, %s2948_s17  ;;  %s3192_s17 = smul.u32 40, %s4146_s10 }
  0x21   : > { %708 = vst.msk [vmem:[#allocation2 + $0xa1] sm:$0x1] %vm693_vm0, %v3281_v0  ;;  %s4128_s5 = sld [smem:[#allocation12_spill]]  ;;  %s4156_s29 = smov (!%p3441_p11, %s4154_s29), 15 }
  0x22   : > { %709 = vst.msk [vmem:[#allocation2 + $0xb9] sm:$0x1] %vm693_vm0, %v3281_v0  ;;  %s3439_s15 = scalar_lea.vmem %s4125_s2, %s2958_s22  ;;  %s4158_s20 = smov (!%p3455_p12, %s650_s20), 15 }
  0x23   : > { %720 = vst.msk [vmem:[#allocation2 + $0x31] sm:$0xff] %vm719_vm1, %v710_v1  ;;  %s2963_s25 = sshll.u32 %s4156_s29, 1  ;;  %s3193_s18 = smul.u32 56, %s4146_s10 }
  0x24   : > { %721 = vst.msk [vmem:[#allocation2 + $0x39] sm:$0xff] %vm719_vm1, %v711_v2  ;;  %s642_s23 = sadd.s32 %s2963_s25, %s3385_s19  ;;  %s4160_s20 = smov (!%p3455_p12, %s4158_s20), 15 }
  0x25   : > { %722 = vst.msk [vmem:[#allocation2 + $0x49] sm:$0xff] %vm719_vm1, %v712_v3  ;;  %s2965_s24 = sshll.u32 %s642_s23, 3  ;;  %s3491_s27 = scalar_lea.vmem %s4106_s7, %s3193_s18 }
  0x26   : > { %723 = vst.msk [vmem:[#allocation2 + $0x51] sm:$0xff] %vm719_vm1, %v713_v4  ;;  %s644_s12 = scalar_lea.vmem %s4102_s3, %s2965_s24  ;;  %s4130_s25 = sshll.u32 %s3392_s21, 3 }
  0x27   : > { %s3462_s16 = scalar_lea.vmem %s4128_s5, %s3192_s17  ;;  %724 = vst.msk [vmem:[#allocation2 + $0x61] sm:$0xff] %vm719_vm1, %v714_v5  ;;  %s3500_s23 = scalar_lea.vmem %s4108_s9, %s4130_s25 }
  0x28   : > { %725 = vst.msk [vmem:[#allocation2 + $0x69] sm:$0xff] %vm719_vm1, %v715_v6  ;;  %s2970_s13 = sshll.u32 %s4160_s20, 1  ;;  %p2979_p13 = scmp.le.s32.totalorder %s3263_s30, 0 }
  0x29   : > { %726 = vst.msk [vmem:[#allocation2 + $0x79] sm:$0xff] %vm719_vm1, %v716_v7  ;;  %s659_s1 = sadd.s32 %s2970_s13, %s3385_s19 }
  0x2a   : > { %727 = vst.msk [vmem:[#allocation2 + $0x81] sm:$0xff] %vm719_vm1, %v717_v8  ;;  %s2972_s2 = sshll.u32 %s659_s1, 3  ;;  %731 = sbr.rel (%p2979_p13) target bundleno = 52 (0x34), region = 60 }
  0x2b   : > { %s661_s5 = scalar_lea.vmem %s4103_s4, %s2972_s2 }
  0x2f   : > { %v732_v9 = vld [vmem:[%s3433_s28] sm:$0xff]  ;;  %v733_v10 = vld [vmem:[%s3433_s28 + $0x8] sm:$0xff] }
  0x30   : > { %v736_v11 = vld [vmem:[%s3439_s15] sm:$0xff]  ;;  %734 = vst.msk [vmem:[#allocation2 + $0x1] sm:$0xff] %vm719_vm1, %v732_v9  ;;  %v737_v12 = vld [vmem:[%s3439_s15 + $0x8] sm:$0xff] }
  0x31   : > { %735 = vst.msk [vmem:[#allocation2 + $0x9] sm:$0xff] %vm719_vm1, %v733_v10 }
  0x32   : > { %739 = vst.msk [vmem:[#allocation2 + $0x19] sm:$0xff] %vm719_vm1, %v736_v11 }
  0x33   : > { %740 = vst.msk [vmem:[#allocation2 + $0x21] sm:$0xff] %vm719_vm1, %v737_v12 }
  0x34 PF: > { %p2980_p0 = scmp.ne.s32.totalorder %s3263_s30, 0 }
  0x36   : > { %744 = sbr.rel (%p2980_p0) target bundleno = 64 (0x40), region = 64 }
  0x3b   : > { %v3282_v13 = vmov 0.0  }
  0x3c   : > { %745 = vst.msk [vmem:[#allocation2 + $0x1] sm:$0xff] %vm719_vm1, %v3282_v13 }
  0x3d   : > { %746 = vst.msk [vmem:[#allocation2 + $0x9] sm:$0xff] %vm719_vm1, %v3282_v13 }
  0x3e   : > { %747 = vst.msk [vmem:[#allocation2 + $0x19] sm:$0xff] %vm719_vm1, %v3282_v13 }
  0x3f   : > { %748 = vst.msk [vmem:[#allocation2 + $0x21] sm:$0xff] %vm719_vm1, %v3282_v13 }
  0x40 PF: > { %p2981_p1 = scmp.ge.s32.totalorder %s3263_s30, 3 }
  0x42   : > { %752 = sbr.rel (%p2981_p1) target bundleno = 76 (0x4c), region = 68 }
  0x47   : > { %v753_v14 = vld [vmem:[%s644_s12] sm:$0xff]  ;;  %v754_v15 = vld [vmem:[%s644_s12 + $0x8] sm:$0xff] }
  0x48   : > { %v758_v16 = vld [vmem:[%s661_s5] sm:$0xff]  ;;  %756 = vst.msk [vmem:[#allocation2 + $0x91] sm:$0xff] %vm719_vm1, %v753_v14  ;;  %v759_v17 = vld [vmem:[%s661_s5 + $0x8] sm:$0xff] }
  0x49   : > { %757 = vst.msk [vmem:[#allocation2 + $0x99] sm:$0xff] %vm719_vm1, %v754_v15 }
  0x4a   : > { %761 = vst.msk [vmem:[#allocation2 + $0xa9] sm:$0xff] %vm719_vm1, %v758_v16 }
  0x4b   : > { %762 = vst.msk [vmem:[#allocation2 + $0xb1] sm:$0xff] %vm719_vm1, %v759_v17 }
  0x4c PF: > { %p2982_p2 = scmp.ne.s32.totalorder %s3263_s30, 3 }
  0x4e   : > { %766 = sbr.rel (%p2982_p2) target bundleno = 88 (0x58), region = 72 }
  0x53   : > { %v3283_v18 = vmov 0.0  }
  0x54   : > { %768 = vst.msk [vmem:[#allocation2 + $0x91] sm:$0xff] %vm719_vm1, %v3283_v18 }
  0x55   : > { %769 = vst.msk [vmem:[#allocation2 + $0x99] sm:$0xff] %vm719_vm1, %v3283_v18 }
  0x56   : > { %770 = vst.msk [vmem:[#allocation2 + $0xa9] sm:$0xff] %vm719_vm1, %v3283_v18 }
  0x57   : > { %771 = vst.msk [vmem:[#allocation2 + $0xb1] sm:$0xff] %vm719_vm1, %v3283_v18 }
  0x58 PF: > { %v798_v19 = vld [vmem:[%s3462_s16 + $0x4] sm:$0xf]  ;;  %vm835_vm2 = vcmask 1043456   ;;  %v785_v20 = vld [vmem:[%s3462_s16] sm:$0xf]  ;;  %v3539_v23 = vld [vmem:[#allocation2 + $0x78] sm:$0xff]  ;;  %s4131_s12 = scalar_lea.vmem %s4105_s6, %s4146_s10 }
  0x59   : > { %v786_v21 = vld [vmem:[#allocation2 + $0x1] sm:$0xff]  ;;  %2983 = vmatpush.msk.msra.mxu0 %vm835_vm2, %v798_v19  ;;  %3190 = vmatpush.msk.msra.mxu3 %vm835_vm2, %v785_v20  ;;  %v787_v26 = vld [vmem:[#allocation2 + $0x9] sm:$0xff]  ;;  %v775_v30 = vld [vmem:[#allocation2 + $0x18] sm:$0xff]  ;;  %vm1855_vm4 = vcmask 48128   ;;  %vm1868_vm12 = vcmask 40960  }
  0x5a   : > { %v996_v22 = vld [vmem:[%s3462_s16 + $0x8] sm:$0xf]  ;;  %2984 = vmatmul.msk.f32.vlgmr.msra.gmra.mxu0 %vm719_vm1, %v786_v21  ;;  %3007 = vmatmul.msk.f32.vlgmr.msra.gmra.mxu3 %vm719_vm1, %v3539_v23  ;;  %v1114_v27 = vld [vmem:[%s3462_s16 + $0xc] sm:$0xf]  ;;  %v3551_v28 = vld [vmem:[#allocation2 + $0x80] sm:$0xff] }
  0x5b   : > { %v984_v24 = vld [vmem:[#allocation2 + $0x2] sm:$0xff]  ;;  %3009 = vmatpush.msk.msra.mxu2 %vm835_vm2, %v996_v22  ;;  %2996 = vmatpush.msk.msrb.mxu0 %vm835_vm2, %v785_v20  ;;  %v985_v29 = vld [vmem:[#allocation2 + $0xa] sm:$0xff]  ;;  %v3559_v31 = vld [vmem:[#allocation2 + $0x19] sm:$0xff]  ;;  %1869 = vst.msk [vmem:[#allocation3] sm:$0x1] %vm1868_vm12, %v3281_v0 }
  0x5c   : > { %v774_v25 = vld [vmem:[#allocation2 + $0x8] sm:$0xff]  ;;  %3010 = vmatmul.msk.f32.vlgmr.msra.gmra.mxu2 %vm719_vm1, %v984_v24  ;;  %3189 = vmatpush.msk.msra.mxu1 %vm835_vm2, %v785_v20  ;;  %v986_v33 = vld [vmem:[#allocation2 + $0x1a] sm:$0xff]  ;;  %v777_v38 = vld [vmem:[#allocation2 + $0x30] sm:$0xff]  ;;  %1870 = vst.msk [vmem:[#allocation3 + $0x18] sm:$0x1] %vm1868_vm12, %v3281_v0 }
  0x5d   : > { %2998 = vmatmul.msk.f32.vlgmr.msra.gmra.mxu1 %vm719_vm1, %v774_v25  ;;  %3191 = vmatpush.msk.msrb.mxu3 %vm835_vm2, %v996_v22  ;;  %v3561_v32 = vld [vmem:[#allocation2 + $0x6a] sm:$0xff]  ;;  %v776_v34 = vld [vmem:[#allocation2 + $0x20] sm:$0xff]  ;;  %v3583_v41 = vld [vmem:[#allocation2 + $0x32] sm:$0xff]  ;;  %1871 = vst.msk [vmem:[#allocation3 + $0x30] sm:$0x1] %vm1868_vm12, %v3281_v0 }
  0x5e   : > { %v3569_v35 = vld [vmem:[#allocation2 + $0x21] sm:$0xff]  ;;  %v3579_v39 = vld [vmem:[#allocation2 + $0x31] sm:$0xff]  ;;  %v3592_v43 = vld [vmem:[#allocation2 + $0x39] sm:$0xff]  ;;  %1872 = vst.msk [vmem:[#allocation3 + $0x48] sm:$0x1] %vm1868_vm12, %v3281_v0 }
  0x5f   : > { %3022 = vmatpush.msk.msra.mxu3 %vm835_vm2, %v1114_v27  ;;  %v3571_v36 = vld [vmem:[#allocation2 + $0x7a] sm:$0xff]  ;;  %v987_v37 = vld [vmem:[#allocation2 + $0x22] sm:$0xff]  ;;  %v3604_v47 = vld [vmem:[#allocation2 + $0x4a] sm:$0xff]  ;;  %1873 = vst.msk [vmem:[#allocation3 + $0x60] sm:$0x1] %vm1868_vm12, %v3281_v0 }
  0x60   : > { %v3581_v40 = vld [vmem:[#allocation2 + $0x82] sm:$0xff]  ;;  %v778_v42 = vld [vmem:[#allocation2 + $0x38] sm:$0xff]  ;;  %v780_v48 = vld [vmem:[#allocation2 + $0x50] sm:$0xff]  ;;  %1874 = vst.msk [vmem:[#allocation3 + $0x78] sm:$0x1] %vm1868_vm12, %v3281_v0 }
  0x61   : > { %v3594_v44 = vld [vmem:[#allocation2 + $0x3a] sm:$0xff]  ;;  %v779_v45 = vld [vmem:[#allocation2 + $0x48] sm:$0xff]  ;;  %v3612_v49 = vld [vmem:[#allocation2 + $0x51] sm:$0xff]  ;;  %1875 = vst.msk [vmem:[#allocation3 + $0x11] sm:$0x1] %vm1868_vm12, %v3281_v0 }
  0x62   : > { %2985 = vmatmul.msk.f32.gmra.mxu0 %vm719_vm1, %v787_v26  ;;  %3008 = vmatmul.msk.f32.gmra.mxu3 %vm719_vm1, %v3551_v28  ;;  %v3602_v46 = vld [vmem:[#allocation2 + $0x49] sm:$0xff]  ;;  %v3614_v50 = vld [vmem:[#allocation2 + $0x52] sm:$0xff]  ;;  %v781_v51 = vld [vmem:[#allocation2 + $0x60] sm:$0xff]  ;;  %1876 = vst.msk [vmem:[#allocation3 + $0x29] sm:$0x1] %vm1868_vm12, %v3281_v0 }
  0x63   : > { %v3622_v52 = vld [vmem:[#allocation2 + $0x61] sm:$0xff]  ;;  %v1231_v55 = vld [vmem:[%s3462_s16 + $0x10] sm:$0xf]  ;;  %v1582_v56 = vld [vmem:[%s3462_s16 + $0x1c] sm:$0xf] }
  0x64   : > { %3011 = vmatmul.msk.f32.gmra.mxu2 %vm719_vm1, %v985_v29  ;;  %v3624_v53 = vld [vmem:[#allocation2 + $0x62] sm:$0xff]  ;;  %v1465_v57 = vld [vmem:[%s3462_s16 + $0x18] sm:$0xf]  ;;  %3035 = vmatpush.msk.msra.mxu0 %vm835_vm2, %v1231_v55  ;;  %v1348_v59 = vld [vmem:[%s3462_s16 + $0x14] sm:$0xf] }
  0x65   : > { %2999 = vmatmul.msk.f32.gmra.mxu1 %vm719_vm1, %v775_v30  ;;  %v782_v54 = vld [vmem:[#allocation2 + $0x68] sm:$0xff]  ;;  %3061 = vmatpush.msk.msrb.mxu2 %vm835_vm2, %v1465_v57  ;;  %v3647_v60 = vld [vmem:[#allocation2 + $0x79] sm:$0xff]  ;;  %v1112_v1 = vld [vmem:[#allocation2 + $0x90] sm:$0xff]  ;;  %1877 = vst.msk [vmem:[#allocation3 + $0x41] sm:$0x1] %vm1868_vm12, %v3281_v0 }
  0x66   : > { %v3638_v58 = vld [vmem:[#allocation2 + $0x69] sm:$0xff]  ;;  %3048 = vmatpush.msk.msrb.mxu1 %vm835_vm2, %v1348_v59  ;;  %v3654_v61 = vld [vmem:[#allocation2 + $0x81] sm:$0xff]  ;;  %v1113_v3 = vld [vmem:[#allocation2 + $0x98] sm:$0xff]  ;;  %1878 = vst.msk [vmem:[#allocation3 + $0x59] sm:$0x1] %vm1868_vm12, %v3281_v0 }
  0x67   : > { %v773_v62 = vld [vmem:[#allocation2] sm:$0xff]  ;;  %v1463_v20 = vld [vmem:[#allocation2 + $0xa8] sm:$0xff]  ;;  %v3725_v22 = vld [vmem:[#allocation2 + $0x92] sm:$0xff]  ;;  %1879 = vst.msk [vmem:[#allocation3 + $0x71] sm:$0x1] %vm1868_vm12, %v3281_v0 }
  0x68   : > { %v1699_v63 = vld [vmem:[%s3462_s16 + $0x20] sm:$0xf]  ;;  %v1229_v57 = vld [vmem:[#allocation2 + $0x91] sm:$0xff]  ;;  %1880 = vst.msk [vmem:[#allocation3 + $0x89] sm:$0x1] %vm1868_vm12, %v3281_v0 }
  0x6a   : > { %2986 = vmatmul.msk.f32.gmra.mxu0 %vm719_vm1, %v3559_v31  ;;  %3019 = vmatmul.msk.f32.vlgmr.msrb.gmra.mxu3 %vm719_vm1, %v3561_v32 }
  0x6b   : > { %3074 = vmatpush.msk.msrb.mxu3 %vm835_vm2, %v1582_v56 }
  0x6c   : > { %3012 = vmatmul.msk.f32.gmra.mxu2 %vm719_vm1, %v986_v33 }
  0x6d   : > { %3000 = vmatmul.msk.f32.gmra.mxu1 %vm719_vm1, %v776_v34 }
  0x72   : > { %2987 = vmatmul.msk.f32.gmra.mxu0 %vm719_vm1, %v3569_v35  ;;  %3020 = vmatmul.msk.f32.gmra.mxu3 %vm719_vm1, %v3571_v36 }
  0x74   : > { %3013 = vmatmul.msk.f32.gmra.mxu2 %vm719_vm1, %v987_v37 }
  0x75   : > { %3001 = vmatmul.msk.f32.gmra.mxu1 %vm719_vm1, %v777_v38 }
  0x7a   : > { %2988 = vmatmul.msk.f32.gmra.mxu0 %vm719_vm1, %v3579_v39  ;;  %3021 = vmatmul.msk.f32.gmra.mxu3 %vm719_vm1, %v3581_v40 }
  0x7c   : > { %3014 = vmatmul.msk.f32.gmra.mxu2 %vm719_vm1, %v3583_v41 }
  0x7d   : > { %3002 = vmatmul.msk.f32.gmra.mxu1 %vm719_vm1, %v778_v42 }
  0x82   : > { %2989 = vmatmul.msk.f32.gmra.mxu0 %vm719_vm1, %v3592_v43  ;;  %3023 = vmatmul.msk.f32.vlgmr.msra.gmra.mxu3 %vm719_vm1, %v775_v30  ;;  %v3736_v30 = vld [vmem:[#allocation2 + $0x9a] sm:$0xff] }
  0x84   : > { %3015 = vmatmul.msk.f32.gmra.mxu2 %vm719_vm1, %v3594_v44 }
  0x85   : > { %3003 = vmatmul.msk.f32.gmra.mxu1 %vm719_vm1, %v779_v45 }
  0x8a   : > { %2990 = vmatmul.msk.f32.gmra.mxu0 %vm719_vm1, %v3602_v46  ;;  %3024 = vmatmul.msk.f32.gmra.mxu3 %vm719_vm1, %v776_v34 }
  0x8c   : > { %3016 = vmatmul.msk.f32.gmra.mxu2 %vm719_vm1, %v3604_v47 }
  0x8d   : > { %3004 = vmatmul.msk.f32.gmra.mxu1 %vm719_vm1, %v780_v48 }
  0x92   : > { %2991 = vmatmul.msk.f32.gmra.mxu0 %vm719_vm1, %v3612_v49  ;;  %3025 = vmatmul.msk.f32.gmra.mxu3 %vm719_vm1, %v777_v38 }
  0x94   : > { %3017 = vmatmul.msk.f32.gmra.mxu2 %vm719_vm1, %v3614_v50 }
  0x95   : > { %3005 = vmatmul.msk.f32.gmra.mxu1 %vm719_vm1, %v781_v51 }
  0x9a   : > { %2992 = vmatmul.msk.f32.gmra.mxu0 %vm719_vm1, %v3622_v52  ;;  %3026 = vmatmul.msk.f32.gmra.mxu3 %vm719_vm1, %v778_v42 }
  0x9c   : > { %3018 = vmatmul.msk.f32.gmra.mxu2 %vm719_vm1, %v3624_v53 }
  0x9d   : > { %3006 = vmatmul.msk.f32.gmra.mxu1 %vm719_vm1, %v782_v54 }
  0xa2   : > { %2993 = vmatmul.msk.f32.gmra.mxu0 %vm719_vm1, %v3638_v58  ;;  %3027 = vmatmul.msk.f32.gmra.mxu3 %vm719_vm1, %v779_v45 }
  0xa4   : > { %3062 = vmatmul.msk.f32.vlgmr.msrb.gmra.mxu2 %vm719_vm1, %v777_v38 }
  0xa5   : > { %3049 = vmatmul.msk.f32.vlgmr.msrb.gmra.mxu1 %vm719_vm1, %v986_v33 }
  0xaa   : > { %2994 = vmatmul.msk.f32.gmra.mxu0 %vm719_vm1, %v3647_v60  ;;  %3028 = vmatmul.msk.f32.gmra.mxu3 %vm719_vm1, %v780_v48 }
  0xac   : > { %3063 = vmatmul.msk.f32.gmra.mxu2 %vm719_vm1, %v778_v42 }
  0xad   : > { %3050 = vmatmul.msk.f32.gmra.mxu1 %vm719_vm1, %v987_v37 }
  0xb2   : > { %2995 = vmatmul.msk.f32.gmra.mxu0 %vm719_vm1, %v3654_v61  ;;  %3029 = vmatmul.msk.f32.gmra.mxu3 %vm719_vm1, %v781_v51 }
  0xb4   : > { %3064 = vmatmul.msk.f32.gmra.mxu2 %vm719_vm1, %v779_v45 }
  0xb5   : > { %3051 = vmatmul.msk.f32.gmra.mxu1 %vm719_vm1, %v3583_v41 }
  0xba   : > { %2997 = vmatmul.msk.f32.vlgmr.msrb.gmra.mxu0 %vm719_vm1, %v773_v62  ;;  %3030 = vmatmul.msk.f32.gmra.mxu3 %vm719_vm1, %v782_v54 }
  0xbb   : > { %3087 = vmatpush.msk.msrb.mxu0 %vm835_vm2, %v1699_v63 }
  0xbc   : > { %3065 = vmatmul.msk.f32.gmra.mxu2 %vm719_vm1, %v780_v48 }
  0xbd   : > { %3052 = vmatmul.msk.f32.gmra.mxu1 %vm719_vm1, %v3594_v44 }
  0xc2   : > { %3036 = vmatmul.msk.f32.vlgmr.msra.gmra.mxu0 %vm719_vm1, %v3559_v31  ;;  %3031 = vmatmul.msk.f32.gmra.mxu3 %vm719_vm1, %v3539_v23 }
  0xc4   : > { %3066 = vmatmul.msk.f32.gmra.mxu2 %vm719_vm1, %v781_v51 }
  0xc5   : > { %3053 = vmatmul.msk.f32.gmra.mxu1 %vm719_vm1, %v3604_v47 }
  0xca   : > { %3037 = vmatmul.msk.f32.gmra.mxu0 %vm719_vm1, %v3569_v35  ;;  %3032 = vmatmul.msk.f32.gmra.mxu3 %vm719_vm1, %v3551_v28 }
  0xcc   : > { %3067 = vmatmul.msk.f32.gmra.mxu2 %vm719_vm1, %v782_v54 }
  0xcd   : > { %3054 = vmatmul.msk.f32.gmra.mxu1 %vm719_vm1, %v3614_v50 }
  0xd2   : > { %3038 = vmatmul.msk.f32.gmra.mxu0 %vm719_vm1, %v3579_v39  ;;  %3033 = vmatmul.msk.f32.gmra.mxu3 %vm719_vm1, %v1112_v1 }
  0xd4   : > { %3068 = vmatmul.msk.f32.gmra.mxu2 %vm719_vm1, %v3539_v23 }
  0xd5   : > { %3055 = vmatmul.msk.f32.gmra.mxu1 %vm719_vm1, %v3624_v53 }
  0xd7   : > { %v3690_v2 = vpop.f32.mrf.mxu0 }
  0xda   : > { %3039 = vmatmul.msk.f32.gmra.mxu0 %vm719_vm1, %v3592_v43  ;;  %v951_v4 = vpop.f32.mrf.mxu1  ;;  %3034 = vmatmul.msk.f32.gmra.mxu3 %vm719_vm1, %v1113_v3 }
  0xdc   : > { %3069 = vmatmul.msk.f32.gmra.mxu2 %vm719_vm1, %v3551_v28  ;;  %v1464_v28 = vld [vmem:[#allocation2 + $0xb0] sm:$0xff] }
  0xdd   : > { %3056 = vmatmul.msk.f32.gmra.mxu1 %vm719_vm1, %v3561_v32  ;;  %v3699_v5 = vpop.f32.mrf.mxu3 }
  0xdf   : > { %v3701_v6 = vpop.f32.mrf.mxu2  ;;  %v859_v7 = vpop.f32.mrf.mxu0 }
  0xe0   : > { %v952_v9 = vadd.f32 %v951_v4, %v859_v7  ;;  %v1230_v7 = vld [vmem:[#allocation2 + $0x99] sm:$0xff] }
  0xe2   : > { %3040 = vmatmul.msk.f32.gmra.mxu0 %vm719_vm1, %v3602_v46  ;;  %v954_v8 = vpop.f32.mrf.mxu1  ;;  %3075 = vmatmul.msk.f32.vlgmr.msrb.gmra.mxu3 %vm719_vm1, %v3579_v39 }
  0xe4   : > { %3070 = vmatmul.msk.f32.gmra.mxu2 %vm719_vm1, %v1112_v1 }
  0xe5   : > { %3057 = vmatmul.msk.f32.gmra.mxu1 %vm719_vm1, %v3571_v36  ;;  %v3710_v10 = vpop.f32.mrf.mxu3 }
  0xe7   : > { %v1056_v11 = vpop.f32.mrf.mxu2  ;;  %v862_v12 = vpop.f32.mrf.mxu0 }
  0xe8   : > { %v1090_v13 = vadd.f32 %v1056_v11, %v952_v9  ;;  %v955_v15 = vadd.f32 %v954_v8, %v862_v12 }
  0xea   : > { %3041 = vmatmul.msk.f32.gmra.mxu0 %vm719_vm1, %v3612_v49  ;;  %v957_v14 = vpop.f32.mrf.mxu1  ;;  %3076 = vmatmul.msk.f32.gmra.mxu3 %vm719_vm1, %v3592_v43 }
  0xec   : > { %3071 = vmatmul.msk.f32.gmra.mxu2 %vm719_vm1, %v1113_v3 }
  0xed   : > { %3058 = vmatmul.msk.f32.gmra.mxu1 %vm719_vm1, %v3581_v40  ;;  %v3719_v16 = vpop.f32.mrf.mxu3 }
  0xef   : > { %v1059_v17 = vpop.f32.mrf.mxu2  ;;  %v865_v18 = vpop.f32.mrf.mxu0 }
  0xf0   : > { %v1091_v19 = vadd.f32 %v1059_v17, %v955_v15  ;;  %v958_v23 = vadd.f32 %v957_v14, %v865_v18 }
  0xf2   : > { %3042 = vmatmul.msk.f32.gmra.mxu0 %vm719_vm1, %v3622_v52  ;;  %v960_v21 = vpop.f32.mrf.mxu1  ;;  %3077 = vmatmul.msk.f32.gmra.mxu3 %vm719_vm1, %v3602_v46 }
  0xf4   : > { %3072 = vmatmul.msk.f32.gmra.mxu2 %vm719_vm1, %v1463_v20 }
  0xf5   : > { %3059 = vmatmul.msk.f32.gmra.mxu1 %vm719_vm1, %v3725_v22  ;;  %v3730_v24 = vpop.f32.mrf.mxu3 }
  0xf7   : > { %v1062_v25 = vpop.f32.mrf.mxu2  ;;  %v868_v26 = vpop.f32.mrf.mxu0 }
  0xf8   : > { %v1092_v27 = vadd.f32 %v1062_v25, %v958_v23  ;;  %v961_v31 = vadd.f32 %v960_v21, %v868_v26  ;;  %v1580_v25 = vld [vmem:[#allocation2 + $0xa9] sm:$0xff] }
  0xfa   : > { %3043 = vmatmul.msk.f32.gmra.mxu0 %vm719_vm1, %v3638_v58  ;;  %v963_v29 = vpop.f32.mrf.mxu1  ;;  %3078 = vmatmul.msk.f32.gmra.mxu3 %vm719_vm1, %v3612_v49 }
  0xfc   : > { %3073 = vmatmul.msk.f32.gmra.mxu2 %vm719_vm1, %v1464_v28  ;;  %v1581_v28 = vld [vmem:[#allocation2 + $0xb1] sm:$0xff] }
  0xfd   : > { %3060 = vmatmul.msk.f32.gmra.mxu1 %vm719_vm1, %v3736_v30  ;;  %v3741_v33 = vpop.f32.mrf.mxu3 }
  0xff   : > { %v1065_v34 = vpop.f32.mrf.mxu2  ;;  %v871_v35 = vpop.f32.mrf.mxu0 }
 0x100   : > { %v1093_v37 = vadd.f32 %v1065_v34, %v961_v31  ;;  %v964_v39 = vadd.f32 %v963_v29, %v871_v35 }
 0x102   : > { %3044 = vmatmul.msk.f32.gmra.mxu0 %vm719_vm1, %v3647_v60  ;;  %v966_v38 = vpop.f32.mrf.mxu1  ;;  %3079 = vmatmul.msk.f32.gmra.mxu3 %vm719_vm1, %v3622_v52 }
 0x105   : > { %v1171_v42 = vpop.f32.mrf.mxu3 }
 0x107   : > { %v1068_v43 = vpop.f32.mrf.mxu2  ;;  %v874_v45 = vpop.f32.mrf.mxu0 }
 0x108   : > { %v1094_v46 = vadd.f32 %v1068_v43, %v964_v39  ;;  %v967_v49 = vadd.f32 %v966_v38, %v874_v45 }
 0x10a   : > { %3045 = vmatmul.msk.f32.gmra.mxu0 %vm719_vm1, %v3654_v61  ;;  %v969_v48 = vpop.f32.mrf.mxu1  ;;  %3080 = vmatmul.msk.f32.gmra.mxu3 %vm719_vm1, %v3638_v58 }
 0x10d   : > { %v1174_v51 = vpop.f32.mrf.mxu3 }
 0x10e   : > { %v1208_v55 = vadd.f32 %v1174_v51, %v1090_v13 }
 0x10f   : > { %v1071_v54 = vpop.f32.mrf.mxu2  ;;  %v877_v56 = vpop.f32.mrf.mxu0 }
 0x110   : > { %v1095_v59 = vadd.f32 %v1071_v54, %v967_v49  ;;  %v970_v62 = vadd.f32 %v969_v48, %v877_v56 }
 0x112   : > { %3046 = vmatmul.msk.f32.gmra.mxu0 %vm719_vm1, %v1229_v57  ;;  %3081 = vmatmul.msk.f32.gmra.mxu3 %vm719_vm1, %v3647_v60  ;;  %v972_v52 = vpop.f32.mrf.mxu1 }
 0x115   : > { %v1177_v63 = vpop.f32.mrf.mxu3 }
 0x116   : > { %v1209_v3 = vadd.f32 %v1177_v63, %v1091_v19 }
 0x117   : > { %v1074_v1 = vpop.f32.mrf.mxu2  ;;  %v880_v4 = vpop.f32.mrf.mxu0 }
 0x118   : > { %v1096_v58 = vadd.f32 %v1074_v1, %v970_v62  ;;  %v973_v9 = vadd.f32 %v972_v52, %v880_v4 }
 0x11a   : > { %3047 = vmatmul.msk.f32.gmra.mxu0 %vm719_vm1, %v1230_v7  ;;  %3082 = vmatmul.msk.f32.gmra.mxu3 %vm719_vm1, %v3654_v61  ;;  %v975_v8 = vpop.f32.mrf.mxu1 }
 0x11d   : > { %v1180_v11 = vpop.f32.mrf.mxu3 }
 0x11e   : > { %v1210_v13 = vadd.f32 %v1180_v11, %v1092_v27 }
 0x11f   : > { %v1077_v12 = vpop.f32.mrf.mxu2  ;;  %v883_v14 = vpop.f32.mrf.mxu0 }
 0x120   : > { %v1097_v60 = vadd.f32 %v1077_v12, %v973_v9  ;;  %v976_v15 = vadd.f32 %v975_v8, %v883_v14 }
 0x122   : > { %3088 = vmatmul.msk.f32.vlgmr.msrb.gmra.mxu0 %vm719_vm1, %v3583_v41  ;;  %v1098_v17 = vadd.f32 %v3719_v16, %v976_v15  ;;  %3083 = vmatmul.msk.f32.gmra.mxu3 %vm719_vm1, %v1229_v57  ;;  %v1405_v63 = vpop.f32.mrf.mxu1 }
 0x125   : > { %v1183_v18 = vpop.f32.mrf.mxu3 }
 0x126   : > { %v1211_v19 = vadd.f32 %v1183_v18, %v1093_v37 }
 0x127   : > { %v886_v20 = vpop.f32.mrf.mxu0 }
 0x12a   : > { %3089 = vmatmul.msk.f32.gmra.mxu0 %vm719_vm1, %v3594_v44  ;;  %3084 = vmatmul.msk.f32.gmra.mxu3 %vm719_vm1, %v1230_v7 }
 0x12d   : > { %v1186_v61 = vpop.f32.mrf.mxu3 }
 0x12e   : > { %v1212_v21 = vadd.f32 %v1186_v61, %v1094_v46 }
 0x12f   : > { %v889_v23 = vpop.f32.mrf.mxu0 }
 0x130   : > { %v982_v54 = vadd.f32 %v3710_v10, %v889_v23 }
 0x132   : > { %3090 = vmatmul.msk.f32.gmra.mxu0 %vm719_vm1, %v3604_v47  ;;  %3085 = vmatmul.msk.f32.gmra.mxu3 %vm719_vm1, %v1580_v25 }
 0x135   : > { %v1189_v41 = vpop.f32.mrf.mxu3 }
 0x136   : > { %v1213_v16 = vadd.f32 %v1189_v41, %v1095_v59  ;;  %v1697_v59 = vld [vmem:[#allocation2 + $0xaa] sm:$0xff] }
 0x137   : > { %v948_v26 = vpop.f32.mrf.mxu0 }
 0x138   : > { %v949_v27 = vadd.f32 %v948_v26, %v3690_v2 }
 0x13a   : > { %v1089_v29 = vadd.f32 %v3701_v6, %v949_v27  ;;  %3091 = vmatmul.msk.f32.gmra.mxu0 %vm719_vm1, %v3614_v50  ;;  %3086 = vmatmul.msk.f32.gmra.mxu3 %vm719_vm1, %v1581_v28 }
 0x13c   : > { %v1207_v44 = vadd.f32 %v1171_v42, %v1089_v29  ;;  %v979_v42 = vadd.f32 %v3699_v5, %v886_v20 }
 0x13d   : > { %v1192_v31 = vpop.f32.mrf.mxu3 }
 0x13e   : > { %v1214_v34 = vadd.f32 %v1192_v31, %v1096_v58  ;;  %v1099_v46 = vadd.f32 %v3730_v24, %v979_v42  ;;  %v1408_v58 = vpop.f32.mrf.mxu1 }
 0x13f   : > { %v1288_v35 = vpop.f32.mrf.mxu0 }
 0x140   : > { %v1324_v47 = vadd.f32 %v1288_v35, %v1207_v44 }
 0x142   : > { %3092 = vmatmul.msk.f32.gmra.mxu0 %vm719_vm1, %v3624_v53  ;;  %v1441_v15 = vadd.f32 %v1405_v63, %v1324_v47 }
 0x145   : > { %v1195_v37 = vpop.f32.mrf.mxu3 }
 0x146   : > { %v1215_v38 = vadd.f32 %v1195_v37, %v1097_v60 }
 0x147   : > { %v1291_v39 = vpop.f32.mrf.mxu0 }
 0x148   : > { %v1325_v2 = vadd.f32 %v1291_v39, %v1208_v55 }
 0x14a   : > { %3093 = vmatmul.msk.f32.gmra.mxu0 %vm719_vm1, %v3561_v32  ;;  %v1100_v32 = vadd.f32 %v3741_v33, %v982_v54  ;;  %v1698_v33 = vld [vmem:[#allocation2 + $0xb2] sm:$0xff]  ;;  %v1442_v25 = vadd.f32 %v1408_v58, %v1325_v2 }
 0x14d   : > { %v1198_v6 = vpop.f32.mrf.mxu3 }
 0x14e   : > { %v1216_v43 = vadd.f32 %v1198_v6, %v1098_v17 }
 0x14f   : > { %v1294_v50 = vpop.f32.mrf.mxu0 }
 0x150   : > { %v3776_v45 = vadd.f32 %v1294_v50, %v1209_v3  ;;  %v1522_v3 = vpop.f32.mrf.mxu2 }
 0x152   : > { %3094 = vmatmul.msk.f32.gmra.mxu0 %vm719_vm1, %v3571_v36 }
 0x155   : > { %v1201_v53 = vpop.f32.mrf.mxu3 }
 0x156   : > { %v1217_v48 = vadd.f32 %v1201_v53, %v1099_v46 }
 0x157   : > { %v1297_v49 = vpop.f32.mrf.mxu0 }
 0x158   : > { %v3782_v51 = vadd.f32 %v1297_v49, %v1210_v13  ;;  %v1525_v8 = vpop.f32.mrf.mxu2  ;;  %v1411_v13 = vpop.f32.mrf.mxu1 }
 0x159   : > { %v1559_v28 = vadd.f32 %v1525_v8, %v1442_v25  ;;  %v1443_v47 = vadd.f32 %v1411_v13, %v3776_v45 }
 0x15a   : > { %3095 = vmatmul.msk.f32.gmra.mxu0 %vm719_vm1, %v3581_v40 }
 0x15d   : > { %v1204_v55 = vpop.f32.mrf.mxu3 }
 0x15e   : > { %v1218_v56 = vadd.f32 %v1204_v55, %v1100_v32 }
 0x15f   : > { %v1300_v5 = vpop.f32.mrf.mxu0 }
 0x160   : > { %v3788_v57 = vadd.f32 %v1300_v5, %v1211_v19  ;;  %v1528_v14 = vpop.f32.mrf.mxu2  ;;  %v1558_v19 = vadd.f32 %v1522_v3, %v1441_v15  ;;  %v1414_v20 = vpop.f32.mrf.mxu1 }
 0x161   : > { %v1560_v2 = vadd.f32 %v1528_v14, %v1443_v47  ;;  %v1444_v53 = vadd.f32 %v1414_v20, %v3782_v51 }
 0x162   : > { %3096 = vmatmul.msk.f32.gmra.mxu0 %vm719_vm1, %v3725_v22 }
 0x165   : > { %v1639_v4 = vpop.f32.mrf.mxu3 }
 0x166   : > { %v1675_v61 = vadd.f32 %v1639_v4, %v1558_v19 }
 0x167   : > { %v1303_v36 = vpop.f32.mrf.mxu0 }
 0x168   : > { %v3792_v24 = vadd.f32 %v1303_v36, %v1212_v21  ;;  %v3815_v21 = vld [vmem:[%s4131_s12] ss:$0 sm:$0xff] }
 0x16a   : > { %3097 = vmatmul.msk.f32.gmra.mxu0 %vm719_vm1, %v3736_v30 }
 0x16d   : > { %v1642_v9 = vpop.f32.mrf.mxu3 }
 0x16e   : > { %v1676_v44 = vadd.f32 %v1642_v9, %v1559_v28 }
 0x16f   : > { %v1306_v10 = vpop.f32.mrf.mxu0 }
 0x170   : > { %v3796_v52 = vadd.f32 %v1306_v10, %v1213_v16  ;;  %v1531_v16 = vpop.f32.mrf.mxu2 }
 0x171   : > { %v1561_v45 = vadd.f32 %v1531_v16, %v1444_v53 }
 0x172   : > { %3098 = vmatmul.msk.f32.gmra.mxu0 %vm719_vm1, %v1697_v59 }
 0x175   : > { %v1645_v18 = vpop.f32.mrf.mxu3 }
 0x176   : > { %v1677_v50 = vadd.f32 %v1645_v18, %v1560_v2 }
 0x177   : > { %v1309_v40 = vpop.f32.mrf.mxu0 }
 0x178   : > { %v3799_v62 = vadd.f32 %v1309_v40, %v1214_v34  ;;  %v1417_v34 = vpop.f32.mrf.mxu1  ;;  %v1534_v39 = vpop.f32.mrf.mxu2 }
 0x179   : > { %v1445_v59 = vadd.f32 %v1417_v34, %v3788_v57 }
 0x17a   : > { %3099 = vmatmul.msk.f32.gmra.mxu0 %vm719_vm1, %v1698_v33 }
 0x17b   : > { %v1562_v63 = vadd.f32 %v1534_v39, %v1445_v59 }
 0x17d   : > { %v1648_v27 = vpop.f32.mrf.mxu3 }
 0x17f   : > { %v1312_v22 = vpop.f32.mrf.mxu0 }
 0x180   : > { %v3802_v1 = vadd.f32 %v1312_v22, %v1215_v38  ;;  %v1420_v49 = vpop.f32.mrf.mxu1  ;;  %v1537_v55 = vpop.f32.mrf.mxu2 }
 0x181   : > { %v1446_v8 = vadd.f32 %v1420_v49, %v3792_v24 }
 0x183   : > { %v1563_v57 = vadd.f32 %v1537_v55, %v1446_v8 }
 0x187   : > { %v1315_v7 = vpop.f32.mrf.mxu0 }
 0x188   : > { %v3804_v30 = vadd.f32 %v1315_v7, %v1216_v43  ;;  %v1651_v43 = vpop.f32.mrf.mxu3  ;;  %v1423_v51 = vpop.f32.mrf.mxu1 }
 0x189   : > { %v1679_v3 = vadd.f32 %v1651_v43, %v1562_v63  ;;  %v1540_v7 = vpop.f32.mrf.mxu2  ;;  %v1447_v20 = vadd.f32 %v1423_v51, %v3796_v52 }
 0x18f   : > { %v1318_v11 = vpop.f32.mrf.mxu0 }
 0x190   : > { %v3806_v12 = vadd.f32 %v1318_v11, %v1217_v48  ;;  %v1654_v36 = vpop.f32.mrf.mxu3 }
 0x191   : > { %v1680_v15 = vadd.f32 %v1654_v36, %v1563_v57 }
 0x197   : > { %v1321_v60 = vpop.f32.mrf.mxu0 }
 0x198   : > { %v3808_v17 = vadd.f32 %v1321_v60, %v1218_v56  ;;  %v1678_v56 = vadd.f32 %v1648_v27, %v1561_v45  ;;  %v1657_v11 = vpop.f32.mrf.mxu3  ;;  %v1426_v60 = vpop.f32.mrf.mxu1 }
 0x19f   : > { %v1756_v23 = vpop.f32.mrf.mxu0 }
 0x1a0   : > { %v1792_v41 = vadd.f32 %v1756_v23, %v1675_v61  ;;  %v1543_v23 = vpop.f32.mrf.mxu2  ;;  %v1660_v24 = vpop.f32.mrf.mxu3 }
 0x1a1   : > { %v1429_v28 = vpop.f32.mrf.mxu1 }
 0x1a2   : > { %v1807_v26 = vadd.f32 %v3815_v21, %v1792_v41  ;;  %v1564_v41 = vadd.f32 %v1540_v7, %v1447_v20 }
 0x1a4   : > { %vm1819_vm3 = vcmp.ge.f32.partialorder %v1807_v26, 0.0  ;;  %v1831_v29 = vmul.f32 0.2, %v1807_v26 }
 0x1a6   : > { %v1843_v31 = vsel %vm1819_vm3, %v1807_v26, %v1831_v29  ;;  %v1681_v26 = vadd.f32 %v1657_v11, %v1564_v41 }
 0x1a7   : > { %1856 = vst.msk [vmem:[#allocation3 + $0x1] sm:$0xff] %vm1855_vm4, %v1843_v31  ;;  %v1759_v35 = vpop.f32.mrf.mxu0 }
 0x1a8   : > { %v1793_v37 = vadd.f32 %v1759_v35, %v1676_v44  ;;  %v1448_v44 = vadd.f32 %v1426_v60, %v3799_v62  ;;  %v1546_v52 = vpop.f32.mrf.mxu2 }
 0x1aa   : > { %v1808_v38 = vadd.f32 %v3815_v21, %v1793_v37  ;;  %v1565_v35 = vadd.f32 %v1543_v23, %v1448_v44  ;;  %v1663_v37 = vpop.f32.mrf.mxu3 }
 0x1ac   : > { %vm1820_vm5 = vcmp.ge.f32.partialorder %v1808_v38, 0.0  ;;  %v1832_v6 = vmul.f32 0.2, %v1808_v38 }
 0x1ae   : > { %v1844_v42 = vsel %vm1820_vm5, %v1808_v38, %v1832_v6  ;;  %v1682_v38 = vadd.f32 %v1660_v24, %v1565_v35  ;;  %v1449_v6 = vadd.f32 %v1429_v28, %v3802_v1 }
 0x1af   : > { %1857 = vst.msk [vmem:[#allocation3 + $0x9] sm:$0xff] %vm1855_vm4, %v1844_v42  ;;  %v1762_v46 = vpop.f32.mrf.mxu0 }
 0x1b0   : > { %v1794_v48 = vadd.f32 %v1762_v46, %v1677_v50  ;;  %v1432_v50 = vpop.f32.mrf.mxu1  ;;  %v1566_v62 = vadd.f32 %v1546_v52, %v1449_v6  ;;  %v1549_v53 = vpop.f32.mrf.mxu2 }
 0x1b2   : > { %v1809_v54 = vadd.f32 %v3815_v21, %v1794_v48  ;;  %v1683_v48 = vadd.f32 %v1663_v37, %v1566_v62 }
 0x1b4   : > { %vm1821_vm6 = vcmp.ge.f32.partialorder %v1809_v54, 0.0  ;;  %v1833_v32 = vmul.f32 0.2, %v1809_v54 }
 0x1b6   : > { %v1845_v5 = vsel %vm1821_vm6, %v1809_v54, %v1833_v32  ;;  %v1666_v54 = vpop.f32.mrf.mxu3  ;;  %v1450_v32 = vadd.f32 %v1432_v50, %v3804_v30 }
 0x1b7   : > { %1858 = vst.msk [vmem:[#allocation3 + $0x19] sm:$0xff] %vm1855_vm4, %v1845_v5  ;;  %v1765_v10 = vpop.f32.mrf.mxu0 }
 0x1b8   : > { %v1795_v40 = vadd.f32 %v1765_v10, %v1678_v56  ;;  %v1435_v56 = vpop.f32.mrf.mxu1  ;;  %v1567_v5 = vadd.f32 %v1549_v53, %v1450_v32  ;;  %v1552_v59 = vpop.f32.mrf.mxu2 }
 0x1ba   : > { %v1810_v33 = vadd.f32 %v3815_v21, %v1795_v40  ;;  %v1684_v30 = vadd.f32 %v1666_v54, %v1567_v5 }
 0x1bc   : > { %vm1822_vm7 = vcmp.ge.f32.partialorder %v1810_v33, 0.0  ;;  %v1834_v22 = vmul.f32 0.2, %v1810_v33 }
 0x1be   : > { %v1846_v4 = vsel %vm1822_vm7, %v1810_v33, %v1834_v22  ;;  %v1451_v33 = vadd.f32 %v1435_v56, %v3806_v12  ;;  %v1669_v63 = vpop.f32.mrf.mxu3 }
 0x1bf   : > { %1859 = vst.msk [vmem:[#allocation3 + $0x21] sm:$0xff] %vm1855_vm4, %v1846_v4  ;;  %v1768_v58 = vpop.f32.mrf.mxu0 }
 0x1c0   : > { %v1796_v9 = vadd.f32 %v1768_v58, %v1679_v3  ;;  %v1568_v3 = vadd.f32 %v1552_v59, %v1451_v33  ;;  %v1438_v12 = vpop.f32.mrf.mxu1 }
 0x1c2   : > { %v1811_v13 = vadd.f32 %v3815_v21, %v1796_v9  ;;  %v1685_v7 = vadd.f32 %v1669_v63, %v1568_v3  ;;  %v1452_v9 = vadd.f32 %v1438_v12, %v3808_v17 }
 0x1c4   : > { %vm1823_vm8 = vcmp.ge.f32.partialorder %v1811_v13, 0.0  ;;  %v1835_v14 = vmul.f32 0.2, %v1811_v13 }
 0x1c6   : > { %v1847_v18 = vsel %vm1823_vm8, %v1811_v13, %v1835_v14  ;;  %v1555_v13 = vpop.f32.mrf.mxu2  ;;  %v1672_v14 = vpop.f32.mrf.mxu3 }
 0x1c7   : > { %1860 = vst.msk [vmem:[#allocation3 + $0x31] sm:$0xff] %vm1855_vm4, %v1847_v18  ;;  %v1771_v19 = vpop.f32.mrf.mxu0  ;;  %v1569_v60 = vadd.f32 %v1555_v13, %v1452_v9 }
 0x1c8   : > { %v1797_v61 = vadd.f32 %v1771_v19, %v1680_v15 }
 0x1c9   : > { %v1686_v18 = vadd.f32 %v1672_v14, %v1569_v60 }
 0x1ca   : > { %v1812_v25 = vadd.f32 %v3815_v21, %v1797_v61 }
 0x1cc   : > { %vm1824_vm9 = vcmp.ge.f32.partialorder %v1812_v25, 0.0  ;;  %v1836_v16 = vmul.f32 0.2, %v1812_v25 }
 0x1ce   : > { %v1848_v27 = vsel %vm1824_vm9, %v1812_v25, %v1836_v16 }
 0x1cf   : > { %1861 = vst.msk [vmem:[#allocation3 + $0x39] sm:$0xff] %vm1855_vm4, %v1848_v27  ;;  %v1774_v29 = vpop.f32.mrf.mxu0 }
 0x1d0   : > { %v1798_v31 = vadd.f32 %v1774_v29, %v1681_v26 }
 0x1d2   : > { %v1813_v34 = vadd.f32 %v3815_v21, %v1798_v31 }
 0x1d4   : > { %vm1825_vm10 = vcmp.ge.f32.partialorder %v1813_v34, 0.0  ;;  %v1837_v47 = vmul.f32 0.2, %v1813_v34 }
 0x1d6   : > { %v1849_v39 = vsel %vm1825_vm10, %v1813_v34, %v1837_v47 }
 0x1d7   : > { %1862 = vst.msk [vmem:[#allocation3 + $0x49] sm:$0xff] %vm1855_vm4, %v1849_v39  ;;  %v1777_v2 = vpop.f32.mrf.mxu0 }
 0x1d8   : > { %v1799_v43 = vadd.f32 %v1777_v2, %v1682_v38 }
 0x1da   : > { %v1814_v42 = vadd.f32 %v3815_v21, %v1799_v43 }
 0x1dc   : > { %vm1826_vm11 = vcmp.ge.f32.partialorder %v1814_v42, 0.0  ;;  %v1838_v46 = vmul.f32 0.2, %v1814_v42 }
 0x1de   : > { %v1850_v49 = vsel %vm1826_vm11, %v1814_v42, %v1838_v46 }
 0x1df   : > { %1863 = vst.msk [vmem:[#allocation3 + $0x51] sm:$0xff] %vm1855_vm4, %v1850_v49  ;;  %v1780_v45 = vpop.f32.mrf.mxu0 }
 0x1e0   : > { %v1800_v55 = vadd.f32 %v1780_v45, %v1683_v48 }
 0x1e2   : > { %v1815_v1 = vadd.f32 %v3815_v21, %v1800_v55 }
 0x1e4   : > { %vm1827_vm13 = vcmp.ge.f32.partialorder %v1815_v1, 0.0  ;;  %v1839_v36 = vmul.f32 0.2, %v1815_v1 }
 0x1e6   : > { %v1851_v10 = vsel %vm1827_vm13, %v1815_v1, %v1839_v36 }
 0x1e7   : > { %1864 = vst.msk [vmem:[#allocation3 + $0x61] sm:$0xff] %vm1855_vm4, %v1851_v10  ;;  %v1783_v40 = vpop.f32.mrf.mxu0 }
 0x1e8   : > { %v1801_v51 = vadd.f32 %v1783_v40, %v1684_v30 }
 0x1ea   : > { %v1816_v22 = vadd.f32 %v3815_v21, %v1801_v51 }
 0x1ec   : > { %vm1828_vm14 = vcmp.ge.f32.partialorder %v1816_v22, 0.0  ;;  %v1840_v4 = vmul.f32 0.2, %v1816_v22 }
 0x1ee   : > { %v1852_v58 = vsel %vm1828_vm14, %v1816_v22, %v1840_v4 }
 0x1ef   : > { %1865 = vst.msk [vmem:[#allocation3 + $0x69] sm:$0xff] %vm1855_vm4, %v1852_v58  ;;  %v1786_v8 = vpop.f32.mrf.mxu0 }
 0x1f0   : > { %v1802_v11 = vadd.f32 %v1786_v8, %v1685_v7 }
 0x1f2   : > { %v1817_v57 = vadd.f32 %v3815_v21, %v1802_v11 }
 0x1f4   : > { %vm1829_vm15 = vcmp.ge.f32.partialorder %v1817_v57, 0.0  ;;  %v1841_v15 = vmul.f32 0.2, %v1817_v57 }
 0x1f6   : > { %v1853_v19 = vsel %vm1829_vm15, %v1817_v57, %v1841_v15 }
 0x1f7   : > { %1866 = vst.msk [vmem:[#allocation3 + $0x79] sm:$0xff] %vm1855_vm4, %v1853_v19  ;;  %v1789_v0 = vpop.f32.mrf.mxu0 }
 0x1f8   : > { %v1803_v20 = vadd.f32 %v1789_v0, %v1686_v18 }
 0x1fa   : > { %v1818_v61 = vadd.f32 %v3815_v21, %v1803_v20 }
 0x1fb   : > { %1883 = sbr.rel (%p2980_p0) target bundleno = 516 (0x204), region = 76 }
 0x1fc   : > { %vm1830_vm0 = vcmp.ge.f32.partialorder %v1818_v61, 0.0  ;;  %v1842_v23 = vmul.f32 0.2, %v1818_v61 }
 0x1fe   : > { %v1854_v25 = vsel %vm1830_vm0, %v1818_v61, %v1842_v23 }
 0x1ff   : > { %1867 = vst.msk [vmem:[#allocation3 + $0x81] sm:$0xff] %vm1855_vm4, %v1854_v25 }
 0x200   : > { %vm1886_vm1 = vcmask 41984   ;;  %v3284_v17 = vmov 0.0  }
 0x201   : > { %1884 = vst.msk [vmem:[#allocation3] sm:$0xff] %vm1855_vm4, %v3284_v17 }
 0x202   : > { %1885 = vst.msk [vmem:[#allocation3 + $0x8] sm:$0xff] %vm1855_vm4, %v3284_v17 }
 0x203   : > { %1887 = vst.msk [vmem:[#allocation3 + $0x10] sm:$0x3] %vm1886_vm1, %v3284_v17 }
 0x204 PF: > { %1890 = sbr.rel (%p2982_p2) target bundleno = 525 (0x20d), region = 80 }
 0x209   : > { %vm1894_vm2 = vcmask 41984   ;;  %v3285_v21 = vmov 0.0  }
 0x20a   : > { %1892 = vst.msk [vmem:[#allocation3 + $0x78] sm:$0xff] %vm1855_vm4, %v3285_v21 }
 0x20b   : > { %1893 = vst.msk [vmem:[#allocation3 + $0x80] sm:$0xff] %vm1855_vm4, %v3285_v21 }
 0x20c   : > { %1895 = vst.msk [vmem:[#allocation3 + $0x88] sm:$0x3] %vm1894_vm2, %v3285_v21 }
 0x20d PF: > { %v1914_v24 = vld [vmem:[%s3491_s27 + $0x6] sm:$0x3f]  ;;  %vm1939_vm3 = vcmask 1045504   ;;  %v1905_v41 = vld [vmem:[%s3491_s27] sm:$0x3f]  ;;  %v1899_v47 = vld [vmem:[#allocation3 + $0x18] sm:$0xff] }
 0x20e   : > { %v1906_v16 = vld [vmem:[#allocation3 + $0x1] sm:$0xff]  ;;  %3102 = vmatpush.msk.msra.mxu1 %vm1939_vm3, %v1914_v24  ;;  %3111 = vmatpush.msk.msra.mxu2 %vm1939_vm3, %v1905_v41  ;;  %v2231_v27 = vld [vmem:[%s3491_s27 + $0x18] sm:$0x3f]  ;;  %v2060_v28 = vld [vmem:[%s3491_s27 + $0xc] sm:$0x3f]  ;;  %s4132_s14 = sld [smem:[#allocation13_spill]] }
 0x20f   : > { %v1897_v26 = vld [vmem:[#allocation3] sm:$0xff]  ;;  %3103 = vmatmul.msk.f32.vlgmr.msra.gmra.mxu1 %vm1855_vm4, %v1906_v16  ;;  %v2146_v44 = vld [vmem:[%s3491_s27 + $0x12] sm:$0x3f]  ;;  %3120 = vmatpush.msk.msra.mxu3 %vm1939_vm3, %v2060_v28  ;;  %v1907_v31 = vld [vmem:[#allocation3 + $0x9] sm:$0xff]  ;;  %vm2684_vm5 = vcmask 64512  }
 0x210   : > { %3112 = vmatmul.msk.f32.vlgmr.msra.gmra.mxu2 %vm1855_vm4, %v1897_v26  ;;  %v2052_v29 = vld [vmem:[#allocation3 + $0x2] sm:$0xff]  ;;  %3129 = vmatpush.msk.msrb.mxu1 %vm1939_vm3, %v2146_v44  ;;  %v2053_v52 = vld [vmem:[#allocation3 + $0xa] sm:$0xff]  ;;  %v1908_v35 = vld [vmem:[#allocation3 + $0x19] sm:$0xff] }
 0x211   : > { %3138 = vmatpush.msk.msrb.mxu2 %vm1939_vm3, %v2231_v27  ;;  %3121 = vmatmul.msk.f32.vlgmr.msra.gmra.mxu3 %vm1855_vm4, %v2052_v29  ;;  %v1898_v34 = vld [vmem:[#allocation3 + $0x8] sm:$0xff]  ;;  %v2054_v37 = vld [vmem:[#allocation3 + $0x1a] sm:$0xff]  ;;  %v3907_v43 = vld [vmem:[#allocation3 + $0x31] sm:$0xff] }
 0x212   : > { %v1909_v38 = vld [vmem:[#allocation3 + $0x21] sm:$0xff]  ;;  %v1901_v50 = vld [vmem:[#allocation3 + $0x30] sm:$0xff]  ;;  %v2487_v46 = vld [vmem:[%s3491_s27 + $0x2a] sm:$0x3f] }
 0x213   : > { %v1900_v39 = vld [vmem:[#allocation3 + $0x20] sm:$0xff]  ;;  %v3909_v42 = vld [vmem:[#allocation3 + $0x32] sm:$0xff]  ;;  %3165 = vmatpush.msk.msra.mxu1 %vm1939_vm3, %v2487_v46  ;;  %v1912_v45 = vld [vmem:[#allocation3 + $0x49] sm:$0xff] }
 0x214   : > { %v2055_v2 = vld [vmem:[#allocation3 + $0x22] sm:$0xff]  ;;  %v2572_v62 = vld [vmem:[%s3491_s27 + $0x30] sm:$0x3f]  ;;  %v3920_v53 = vld [vmem:[#allocation3 + $0x39] sm:$0xff]  ;;  %s4133_s15 = scalar_lea.vmem %s4132_s14, %s4146_s10 }
 0x215   : > { %v2316_v6 = vld [vmem:[%s3491_s27 + $0x1e] sm:$0x3f]  ;;  %3174 = vmatpush.msk.msra.mxu2 %vm1939_vm3, %v2572_v62  ;;  %v2402_v54 = vld [vmem:[%s3491_s27 + $0x24] sm:$0x3f]  ;;  %v2058_v55 = vld [vmem:[#allocation3 + $0x4a] sm:$0xff] }
 0x216   : > { %3147 = vmatpush.msk.msrb.mxu3 %vm1939_vm3, %v2316_v6  ;;  %v1902_v48 = vld [vmem:[#allocation3 + $0x38] sm:$0xff]  ;;  %3156 = vmatpush.msk.msra.mxu0 %vm1939_vm3, %v2402_v54  ;;  %v1903_v32 = vld [vmem:[#allocation3 + $0x48] sm:$0xff]  ;;  %v1904_v56 = vld [vmem:[#allocation3 + $0x50] sm:$0xff] }
 0x217   : > { %3104 = vmatmul.msk.f32.gmra.mxu1 %vm1855_vm4, %v1907_v31  ;;  %v3922_v49 = vld [vmem:[#allocation3 + $0x3a] sm:$0xff]  ;;  %3157 = vmatmul.msk.f32.vlgmr.msra.gmra.mxu0 %vm1855_vm4, %v1901_v50  ;;  %v1913_v1 = vld [vmem:[#allocation3 + $0x51] sm:$0xff]  ;;  %v2399_v30 = vld [vmem:[#allocation3 + $0x68] sm:$0xff] }
 0x218   : > { %3113 = vmatmul.msk.f32.gmra.mxu2 %vm1855_vm4, %v1898_v34  ;;  %v2059_v5 = vld [vmem:[#allocation3 + $0x52] sm:$0xff]  ;;  %v2398_v36 = vld [vmem:[#allocation3 + $0x60] sm:$0xff]  ;;  %v2230_v51 = vld [vmem:[#allocation3 + $0x69] sm:$0xff] }
 0x219   : > { %3122 = vmatmul.msk.f32.gmra.mxu3 %vm1855_vm4, %v2053_v52  ;;  %v2400_v10 = vld [vmem:[#allocation3 + $0x78] sm:$0xff]  ;;  %v2401_v59 = vld [vmem:[#allocation3 + $0x80] sm:$0xff]  ;;  %v2315_v63 = vld [vmem:[#allocation3 + $0x6a] sm:$0xff] }
 0x21a   : > { %v2229_v40 = vld [vmem:[#allocation3 + $0x61] sm:$0xff]  ;;  %v2485_v17 = vld [vmem:[#allocation3 + $0x79] sm:$0xff] }
 0x21b   : > { %v2314_v33 = vld [vmem:[#allocation3 + $0x62] sm:$0xff]  ;;  %v2570_v21 = vld [vmem:[#allocation3 + $0x7a] sm:$0xff] }
 0x21c   : > { %v2486_v27 = vld [vmem:[#allocation3 + $0x81] sm:$0xff] }
 0x21d   : > { %v2571_v28 = vld [vmem:[#allocation3 + $0x82] sm:$0xff] }
 0x21f   : > { %3105 = vmatmul.msk.f32.gmra.mxu1 %vm1855_vm4, %v1908_v35  ;;  %3158 = vmatmul.msk.f32.gmra.mxu0 %vm1855_vm4, %v1902_v48 }
 0x220   : > { %3114 = vmatmul.msk.f32.gmra.mxu2 %vm1855_vm4, %v1899_v47 }
 0x221   : > { %3123 = vmatmul.msk.f32.gmra.mxu3 %vm1855_vm4, %v2054_v37 }
 0x227   : > { %3106 = vmatmul.msk.f32.gmra.mxu1 %vm1855_vm4, %v1909_v38  ;;  %3159 = vmatmul.msk.f32.gmra.mxu0 %vm1855_vm4, %v1903_v32 }
 0x228   : > { %3115 = vmatmul.msk.f32.gmra.mxu2 %vm1855_vm4, %v1900_v39 }
 0x229   : > { %3124 = vmatmul.msk.f32.gmra.mxu3 %vm1855_vm4, %v2055_v2 }
 0x22f   : > { %3107 = vmatmul.msk.f32.gmra.mxu1 %vm1855_vm4, %v3907_v43  ;;  %3160 = vmatmul.msk.f32.gmra.mxu0 %vm1855_vm4, %v1904_v56 }
 0x230   : > { %3116 = vmatmul.msk.f32.gmra.mxu2 %vm1855_vm4, %v1901_v50 }
 0x231   : > { %3125 = vmatmul.msk.f32.gmra.mxu3 %vm1855_vm4, %v3909_v42 }
 0x237   : > { %3108 = vmatmul.msk.f32.gmra.mxu1 %vm1855_vm4, %v3920_v53  ;;  %3161 = vmatmul.msk.f32.gmra.mxu0 %vm1855_vm4, %v2398_v36 }
 0x238   : > { %3117 = vmatmul.msk.f32.gmra.mxu2 %vm1855_vm4, %v1902_v48 }
 0x239   : > { %3126 = vmatmul.msk.f32.gmra.mxu3 %vm1855_vm4, %v3922_v49 }
 0x23f   : > { %3109 = vmatmul.msk.f32.gmra.mxu1 %vm1855_vm4, %v1912_v45  ;;  %3162 = vmatmul.msk.f32.gmra.mxu0 %vm1855_vm4, %v2399_v30 }
 0x240   : > { %3118 = vmatmul.msk.f32.gmra.mxu2 %vm1855_vm4, %v1903_v32 }
 0x241   : > { %3127 = vmatmul.msk.f32.gmra.mxu3 %vm1855_vm4, %v2058_v55 }
 0x247   : > { %3110 = vmatmul.msk.f32.gmra.mxu1 %vm1855_vm4, %v1913_v1  ;;  %3163 = vmatmul.msk.f32.gmra.mxu0 %vm1855_vm4, %v2400_v10 }
 0x248   : > { %3119 = vmatmul.msk.f32.gmra.mxu2 %vm1855_vm4, %v1904_v56 }
 0x249   : > { %3128 = vmatmul.msk.f32.gmra.mxu3 %vm1855_vm4, %v2059_v5 }
 0x24f   : > { %3130 = vmatmul.msk.f32.vlgmr.msrb.gmra.mxu1 %vm1855_vm4, %v1899_v47  ;;  %3164 = vmatmul.msk.f32.gmra.mxu0 %vm1855_vm4, %v2401_v59 }
 0x250   : > { %3139 = vmatmul.msk.f32.vlgmr.msrb.gmra.mxu2 %vm1855_vm4, %v1908_v35 }
 0x251   : > { %3148 = vmatmul.msk.f32.vlgmr.msrb.gmra.mxu3 %vm1855_vm4, %v2054_v37 }
 0x257   : > { %3131 = vmatmul.msk.f32.gmra.mxu1 %vm1855_vm4, %v1900_v39 }
 0x258   : > { %3140 = vmatmul.msk.f32.gmra.mxu2 %vm1855_vm4, %v1909_v38 }
 0x259   : > { %3149 = vmatmul.msk.f32.gmra.mxu3 %vm1855_vm4, %v2055_v2 }
 0x25f   : > { %3132 = vmatmul.msk.f32.gmra.mxu1 %vm1855_vm4, %v1901_v50 }
 0x260   : > { %3141 = vmatmul.msk.f32.gmra.mxu2 %vm1855_vm4, %v3907_v43 }
 0x261   : > { %3150 = vmatmul.msk.f32.gmra.mxu3 %vm1855_vm4, %v3909_v42 }
 0x267   : > { %3133 = vmatmul.msk.f32.gmra.mxu1 %vm1855_vm4, %v1902_v48 }
 0x268   : > { %3142 = vmatmul.msk.f32.gmra.mxu2 %vm1855_vm4, %v3920_v53 }
 0x269   : > { %3151 = vmatmul.msk.f32.gmra.mxu3 %vm1855_vm4, %v3922_v49 }
 0x26f   : > { %3134 = vmatmul.msk.f32.gmra.mxu1 %vm1855_vm4, %v1903_v32 }
 0x270   : > { %3143 = vmatmul.msk.f32.gmra.mxu2 %vm1855_vm4, %v1912_v45 }
 0x271   : > { %3152 = vmatmul.msk.f32.gmra.mxu3 %vm1855_vm4, %v2058_v55 }
 0x277   : > { %3135 = vmatmul.msk.f32.gmra.mxu1 %vm1855_vm4, %v1904_v56 }
 0x278   : > { %3144 = vmatmul.msk.f32.gmra.mxu2 %vm1855_vm4, %v1913_v1 }
 0x279   : > { %3153 = vmatmul.msk.f32.gmra.mxu3 %vm1855_vm4, %v2059_v5 }
 0x27f   : > { %3136 = vmatmul.msk.f32.gmra.mxu1 %vm1855_vm4, %v2398_v36 }
 0x280   : > { %3145 = vmatmul.msk.f32.gmra.mxu2 %vm1855_vm4, %v2229_v40 }
 0x281   : > { %3154 = vmatmul.msk.f32.gmra.mxu3 %vm1855_vm4, %v2314_v33 }
 0x287   : > { %3137 = vmatmul.msk.f32.gmra.mxu1 %vm1855_vm4, %v2399_v30 }
 0x288   : > { %3146 = vmatmul.msk.f32.gmra.mxu2 %vm1855_vm4, %v2230_v51 }
 0x289   : > { %3155 = vmatmul.msk.f32.gmra.mxu3 %vm1855_vm4, %v2315_v63 }
 0x28c   : > { %v1960_v22 = vpop.f32.mrf.mxu1 }
 0x28f   : > { %3166 = vmatmul.msk.f32.vlgmr.msra.gmra.mxu1 %vm1855_vm4, %v3907_v43 }
 0x290   : > { %3175 = vmatmul.msk.f32.vlgmr.msra.gmra.mxu2 %vm1855_vm4, %v3909_v42 }
 0x293   : > { %v2028_v3 = vpop.f32.mrf.mxu2 }
 0x294   : > { %v3977_v4 = vadd.f32 %v2028_v3, %v1960_v22  ;;  %v1963_v12 = vpop.f32.mrf.mxu1  ;;  %v2105_v57 = vpop.f32.mrf.mxu3 }
 0x297   : > { %3167 = vmatmul.msk.f32.gmra.mxu1 %vm1855_vm4, %v3920_v53 }
 0x298   : > { %3176 = vmatmul.msk.f32.gmra.mxu2 %vm1855_vm4, %v3922_v49 }
 0x29b   : > { %v2031_v7 = vpop.f32.mrf.mxu2 }
 0x29c   : > { %v3983_v58 = vadd.f32 %v2031_v7, %v1963_v12  ;;  %v1966_v8 = vpop.f32.mrf.mxu1  ;;  %v2108_v0 = vpop.f32.mrf.mxu3 }
 0x29e   : > { %v2130_v10 = vadd.f32 %v2108_v0, %v3983_v58 }
 0x29f   : > { %3168 = vmatmul.msk.f32.gmra.mxu1 %vm1855_vm4, %v1912_v45  ;;  %v2447_v45 = vpop.f32.mrf.mxu0 }
 0x2a0   : > { %3177 = vmatmul.msk.f32.gmra.mxu2 %vm1855_vm4, %v2058_v55  ;;  %v2129_v55 = vadd.f32 %v2105_v57, %v3977_v4  ;;  %v4040_v4 = vld [vmem:[%s4133_s15] ss:$0 sm:$0xff] }
 0x2a3   : > { %v2034_v9 = vpop.f32.mrf.mxu2 }
 0x2a4   : > { %v3987_v11 = vadd.f32 %v2034_v9, %v1966_v8  ;;  %v1969_v13 = vpop.f32.mrf.mxu1  ;;  %v2111_v24 = vpop.f32.mrf.mxu3 }
 0x2a6   : > { %v2131_v58 = vadd.f32 %v2111_v24, %v3987_v11 }
 0x2a7   : > { %3169 = vmatmul.msk.f32.gmra.mxu1 %vm1855_vm4, %v1913_v1  ;;  %v2450_v30 = vpop.f32.mrf.mxu0 }
 0x2a8   : > { %3178 = vmatmul.msk.f32.gmra.mxu2 %vm1855_vm4, %v2059_v5 }
 0x2ab   : > { %v2037_v14 = vpop.f32.mrf.mxu2 }
 0x2ac   : > { %v3991_v60 = vadd.f32 %v2037_v14, %v1969_v13  ;;  %v1972_v15 = vpop.f32.mrf.mxu1  ;;  %v2114_v29 = vpop.f32.mrf.mxu3 }
 0x2af   : > { %3170 = vmatmul.msk.f32.gmra.mxu1 %vm1855_vm4, %v2229_v40  ;;  %v2453_v8 = vpop.f32.mrf.mxu0 }
 0x2b0   : > { %3179 = vmatmul.msk.f32.gmra.mxu2 %vm1855_vm4, %v2314_v33 }
 0x2b3   : > { %v2040_v18 = vpop.f32.mrf.mxu2 }
 0x2b4   : > { %v3995_v19 = vadd.f32 %v2040_v18, %v1972_v15  ;;  %v1975_v20 = vpop.f32.mrf.mxu1  ;;  %v4009_v52 = vpop.f32.mrf.mxu3 }
 0x2b7   : > { %3171 = vmatmul.msk.f32.gmra.mxu1 %vm1855_vm4, %v2230_v51 }
 0x2b8   : > { %3180 = vmatmul.msk.f32.gmra.mxu2 %vm1855_vm4, %v2315_v63 }
 0x2bb   : > { %v2043_v61 = vpop.f32.mrf.mxu2 }
 0x2bc   : > { %v3999_v23 = vadd.f32 %v2043_v61, %v1975_v20  ;;  %v1978_v25 = vpop.f32.mrf.mxu1  ;;  %v4011_v38 = vpop.f32.mrf.mxu3 }
 0x2bf   : > { %3172 = vmatmul.msk.f32.gmra.mxu1 %vm1855_vm4, %v2485_v17 }
 0x2c0   : > { %3181 = vmatmul.msk.f32.gmra.mxu2 %vm1855_vm4, %v2570_v21 }
 0x2c3   : > { %v2046_v41 = vpop.f32.mrf.mxu2 }
 0x2c4   : > { %v4003_v16 = vadd.f32 %v2046_v41, %v1978_v25  ;;  %v1981_v26 = vpop.f32.mrf.mxu1  ;;  %v4013_v43 = vpop.f32.mrf.mxu3  ;;  %v2132_v41 = vadd.f32 %v2114_v29, %v3991_v60  ;;  %v2133_v60 = vadd.f32 %v4009_v52, %v3995_v19  ;;  %v2134_v19 = vadd.f32 %v4011_v38, %v3999_v23 }
 0x2c6   : > { %v2135_v38 = vadd.f32 %v4013_v43, %v4003_v16 }
 0x2c7   : > { %3173 = vmatmul.msk.f32.gmra.mxu1 %vm1855_vm4, %v2486_v27 }
 0x2c8   : > { %3182 = vmatmul.msk.f32.gmra.mxu2 %vm1855_vm4, %v2571_v28 }
 0x2cb   : > { %v2049_v44 = vpop.f32.mrf.mxu2 }
 0x2cc   : > { %v4007_v31 = vadd.f32 %v2049_v44, %v1981_v26  ;;  %v2191_v34 = vpop.f32.mrf.mxu1  ;;  %v4017_v62 = vpop.f32.mrf.mxu3 }
 0x2cd   : > { %v2215_v5 = vadd.f32 %v2191_v34, %v2129_v55  ;;  %v2456_v26 = vpop.f32.mrf.mxu0 }
 0x2ce   : > { %v2136_v43 = vadd.f32 %v4017_v62, %v4007_v31 }
 0x2d3   : > { %v2276_v35 = vpop.f32.mrf.mxu2 }
 0x2d4   : > { %v2194_v47 = vpop.f32.mrf.mxu1  ;;  %v2361_v48 = vpop.f32.mrf.mxu3  ;;  %v2300_v36 = vadd.f32 %v2276_v35, %v2215_v5 }
 0x2d5   : > { %v2216_v33 = vadd.f32 %v2194_v47, %v2130_v10 }
 0x2d6   : > { %v2385_v40 = vadd.f32 %v2361_v48, %v2300_v36 }
 0x2d8   : > { %v2471_v3 = vadd.f32 %v2447_v45, %v2385_v40 }
 0x2db   : > { %v2279_v37 = vpop.f32.mrf.mxu2 }
 0x2dc   : > { %v2197_v39 = vpop.f32.mrf.mxu1  ;;  %v2364_v1 = vpop.f32.mrf.mxu3  ;;  %v2301_v63 = vadd.f32 %v2279_v37, %v2216_v33 }
 0x2dd   : > { %v2217_v14 = vadd.f32 %v2197_v39, %v2131_v58 }
 0x2de   : > { %v2386_v7 = vadd.f32 %v2364_v1, %v2301_v63 }
 0x2e0   : > { %v2472_v18 = vadd.f32 %v2450_v30, %v2386_v7 }
 0x2e3   : > { %v2282_v2 = vpop.f32.mrf.mxu2 }
 0x2e4   : > { %v2200_v6 = vpop.f32.mrf.mxu1  ;;  %v2367_v22 = vpop.f32.mrf.mxu3  ;;  %v2302_v0 = vadd.f32 %v2282_v2, %v2217_v14 }
 0x2e5   : > { %v2218_v28 = vadd.f32 %v2200_v6, %v2132_v41 }
 0x2e6   : > { %v2387_v11 = vadd.f32 %v2367_v22, %v2302_v0 }
 0x2e8   : > { %v2473_v34 = vadd.f32 %v2453_v8, %v2387_v11 }
 0x2eb   : > { %v2285_v50 = vpop.f32.mrf.mxu2 }
 0x2ec   : > { %v4015_v42 = vpop.f32.mrf.mxu1  ;;  %v2370_v61 = vpop.f32.mrf.mxu3  ;;  %v2303_v35 = vadd.f32 %v2285_v50, %v2218_v28 }
 0x2ed   : > { %v2219_v6 = vadd.f32 %v4015_v42, %v2133_v60  ;;  %v2459_v50 = vpop.f32.mrf.mxu0 }
 0x2ee   : > { %v2388_v29 = vadd.f32 %v2370_v61, %v2303_v35 }
 0x2f0   : > { %v2474_v5 = vadd.f32 %v2456_v26, %v2388_v29 }
 0x2f3   : > { %v4019_v46 = vpop.f32.mrf.mxu2 }
 0x2f4   : > { %v4021_v53 = vpop.f32.mrf.mxu1  ;;  %v2373_v2 = vpop.f32.mrf.mxu3  ;;  %v2304_v36 = vadd.f32 %v4019_v46, %v2219_v6 }
 0x2f5   : > { %v2220_v22 = vadd.f32 %v4021_v53, %v2134_v19  ;;  %v2462_v8 = vpop.f32.mrf.mxu0 }
 0x2f6   : > { %v2389_v52 = vadd.f32 %v2373_v2, %v2304_v36 }
 0x2f8   : > { %v2475_v46 = vadd.f32 %v2459_v50, %v2389_v52 }
 0x2fb   : > { %v4023_v49 = vpop.f32.mrf.mxu2 }
 0x2fc   : > { %v4025_v54 = vpop.f32.mrf.mxu1  ;;  %v2376_v42 = vpop.f32.mrf.mxu3 }
 0x2fd   : > { %v2221_v14 = vadd.f32 %v4025_v54, %v2135_v38 }
 0x303   : > { %v4027_v32 = vpop.f32.mrf.mxu2 }
 0x304   : > { %v4030_v56 = vpop.f32.mrf.mxu1  ;;  %v2306_v0 = vadd.f32 %v4027_v32, %v2221_v14 }
 0x305   : > { %v2222_v11 = vadd.f32 %v4030_v56, %v2136_v43 }
 0x30b   : > { %v4033_v59 = vpop.f32.mrf.mxu2 }
 0x30c   : > { %v2532_v51 = vpop.f32.mrf.mxu1  ;;  %v2307_v26 = vadd.f32 %v4033_v59, %v2222_v11 }
 0x30d   : > { %v2556_v12 = vadd.f32 %v2532_v51, %v2471_v3 }
 0x313   : > { %v2617_v9 = vpop.f32.mrf.mxu2 }
 0x314   : > { %v2641_v13 = vadd.f32 %v2617_v9, %v2556_v12  ;;  %v2535_v57 = vpop.f32.mrf.mxu1  ;;  %v2305_v12 = vadd.f32 %v4023_v49, %v2220_v22  ;;  %v2379_v49 = vpop.f32.mrf.mxu3 }
 0x315   : > { %v2557_v17 = vadd.f32 %v2535_v57, %v2472_v18 }
 0x316   : > { %v2652_v15 = vadd.f32 %v4040_v4, %v2641_v13  ;;  %v2390_v13 = vadd.f32 %v2376_v42, %v2305_v12 }
 0x318   : > { %vm2660_vm4 = vcmp.ge.f32.partialorder %v2652_v15, 0.0  ;;  %v2668_v20 = vmul.f32 0.2, %v2652_v15  ;;  %v2476_v18 = vadd.f32 %v2462_v8, %v2390_v13 }
 0x31a   : > { %v2676_v25 = vsel %vm2660_vm4, %v2652_v15, %v2668_v20 }
 0x31b   : > { %2685 = vst.msk [vmem:[%s3500_s23] sm:$0xff] %vm2684_vm5, %v2676_v25  ;;  %v2620_v21 = vpop.f32.mrf.mxu2 }
 0x31c   : > { %v2642_v24 = vadd.f32 %v2620_v21, %v2557_v17  ;;  %v2538_v27 = vpop.f32.mrf.mxu1  ;;  %v2465_v17 = vpop.f32.mrf.mxu0  ;;  %v2391_v21 = vadd.f32 %v2379_v49, %v2306_v0 }
 0x31d   : > { %v2558_v39 = vadd.f32 %v2538_v27, %v2473_v34  ;;  %v2382_v28 = vpop.f32.mrf.mxu3 }
 0x31e   : > { %v2653_v44 = vadd.f32 %v4040_v4, %v2642_v24  ;;  %v2477_v32 = vadd.f32 %v2465_v17, %v2391_v21  ;;  %v2392_v31 = vadd.f32 %v2382_v28, %v2307_v26 }
 0x320   : > { %vm2661_vm6 = vcmp.ge.f32.partialorder %v2653_v44, 0.0  ;;  %v2669_v47 = vmul.f32 0.2, %v2653_v44 }
 0x322   : > { %v2677_v37 = vsel %vm2661_vm6, %v2653_v44, %v2669_v47 }
 0x323   : > { %2686 = vst.msk [vmem:[%s3500_s23 + $0x8] sm:$0xff] %vm2684_vm5, %v2677_v37  ;;  %v2623_v48 = vpop.f32.mrf.mxu2 }
 0x324   : > { %v2643_v45 = vadd.f32 %v2623_v48, %v2558_v39  ;;  %v2541_v55 = vpop.f32.mrf.mxu1  ;;  %v2468_v47 = vpop.f32.mrf.mxu0 }
 0x325   : > { %v2559_v40 = vadd.f32 %v2541_v55, %v2474_v5  ;;  %v2478_v39 = vadd.f32 %v2468_v47, %v2392_v31 }
 0x326   : > { %v2654_v1 = vadd.f32 %v4040_v4, %v2643_v45 }
 0x328   : > { %vm2662_vm7 = vcmp.ge.f32.partialorder %v2654_v1, 0.0  ;;  %v2670_v30 = vmul.f32 0.2, %v2654_v1 }
 0x32a   : > { %v2678_v10 = vsel %vm2662_vm7, %v2654_v1, %v2670_v30 }
 0x32b   : > { %2687 = vst.msk [vmem:[%s3500_s23 + $0x10] sm:$0xff] %vm2684_vm5, %v2678_v10  ;;  %v2626_v33 = vpop.f32.mrf.mxu2 }
 0x32c   : > { %v2644_v51 = vadd.f32 %v2626_v33, %v2559_v40  ;;  %v2544_v63 = vpop.f32.mrf.mxu1 }
 0x32d   : > { %v2560_v58 = vadd.f32 %v2544_v63, %v2475_v46 }
 0x32e   : > { %v2655_v3 = vadd.f32 %v4040_v4, %v2644_v51 }
 0x330   : > { %vm2663_vm8 = vcmp.ge.f32.partialorder %v2655_v3, 0.0  ;;  %v2671_v7 = vmul.f32 0.2, %v2655_v3 }
 0x332   : > { %v2679_v9 = vsel %vm2663_vm8, %v2655_v3, %v2671_v7 }
 0x333   : > { %2688 = vst.msk [vmem:[%s3500_s23 + $0x18] sm:$0xff] %vm2684_vm5, %v2679_v9  ;;  %v2629_v23 = vpop.f32.mrf.mxu2 }
 0x334   : > { %v2645_v57 = vadd.f32 %v2629_v23, %v2560_v58  ;;  %v2547_v53 = vpop.f32.mrf.mxu1 }
 0x335   : > { %v2561_v25 = vadd.f32 %v2547_v53, %v2476_v18 }
 0x336   : > { %v2656_v15 = vadd.f32 %v4040_v4, %v2645_v57 }
 0x338   : > { %vm2664_vm9 = vcmp.ge.f32.partialorder %v2656_v15, 0.0  ;;  %v2672_v20 = vmul.f32 0.2, %v2656_v15 }
 0x33a   : > { %v2680_v61 = vsel %vm2664_vm9, %v2656_v15, %v2672_v20 }
 0x33b   : > { %2689 = vst.msk [vmem:[%s3500_s23 + $0x20] sm:$0xff] %vm2684_vm5, %v2680_v61  ;;  %v2632_v16 = vpop.f32.mrf.mxu2 }
 0x33c   : > { %v2646_v54 = vadd.f32 %v2632_v16, %v2561_v25  ;;  %v2550_v41 = vpop.f32.mrf.mxu1 }
 0x33d   : > { %v2562_v34 = vadd.f32 %v2550_v41, %v2477_v32 }
 0x33e   : > { %v2657_v24 = vadd.f32 %v4040_v4, %v2646_v54 }
 0x340   : > { %vm2665_vm10 = vcmp.ge.f32.partialorder %v2657_v24, 0.0  ;;  %v2673_v27 = vmul.f32 0.2, %v2657_v24 }
 0x342   : > { %v2681_v44 = vsel %vm2665_vm10, %v2657_v24, %v2673_v27 }
 0x343   : > { %2690 = vst.msk [vmem:[%s3500_s23 + $0x28] sm:$0xff] %vm2684_vm5, %v2681_v44  ;;  %v2635_v35 = vpop.f32.mrf.mxu2 }
 0x344   : > { %v2647_v62 = vadd.f32 %v2635_v35, %v2562_v34  ;;  %v2553_v37 = vpop.f32.mrf.mxu1 }
 0x345   : > { %v2563_v48 = vadd.f32 %v2553_v37, %v2478_v39 }
 0x346   : > { %v2658_v56 = vadd.f32 %v4040_v4, %v2647_v62 }
 0x348   : > { %vm2666_vm11 = vcmp.ge.f32.partialorder %v2658_v56, 0.0  ;;  %v2674_v2 = vmul.f32 0.2, %v2658_v56 }
 0x34a   : > { %v2682_v59 = vsel %vm2666_vm11, %v2658_v56, %v2674_v2 }
 0x34b   : > { %2691 = vst.msk [vmem:[%s3500_s23 + $0x30] sm:$0xff] %vm2684_vm5, %v2682_v59  ;;  %v2638_v60 = vpop.f32.mrf.mxu2 }
 0x34c   : > { %v2648_v29 = vadd.f32 %v2638_v60, %v2563_v48 }
 0x34e   : > { %v2659_v45 = vadd.f32 %v4040_v4, %v2648_v29 }
 0x350   : > { %vm2667_vm12 = vcmp.ge.f32.partialorder %v2659_v45, 0.0  ;;  %v2675_v55 = vmul.f32 0.2, %v2659_v45 }
 0x352   : > { %v2683_v6 = vsel %vm2667_vm12, %v2659_v45, %v2675_v55 }
 0x353   : > { %2692 = vst.msk [vmem:[%s3500_s23 + $0x38] sm:$0xff] %vm2684_vm5, %v2683_v6 }
 0x354 PF: > { %s4134_s10 = sld [smem:[#allocation6_spill]] }
 0x355   : > { %s4135_s30 = sld [smem:[#allocation4_spill]] }
 0x356   : > { %s4137_s11 = sld [smem:[#allocation7_spill]] }
 0x357   : > { %s4138_s12 = sld [smem:[#allocation8_spill]] }
 0x35a   : > { %s19_s13 = sadd.s32 1, %s4134_s10   ;;  %s4136_s10 = sld [smem:[#allocation5_spill]] }
 0x35b   : > { %p16_p3 = scmp.ge.s32.totalorder %s19_s13, 10  }
 0x35d   :  { %18 = sbr.rel (!%p16_p3) target bundleno = 6 (0x6), region = 143 }

</bundles_post_ra>
